<compile_context>
chip_gen: v7x
topology: tpu7x:2x2x1
jax: 0.10.0
libtpu: 0.0.40
codegen_flags: <defaults>
</compile_context>

<pallas_src>
import jax
import jax.numpy as jnp
from jax.experimental import pallas as pl
from jax.experimental.pallas import tpu as pltpu

LANE = 128


# ----------------------------------------------------------------------------
# Kernel: Cox partial negative log-likelihood, blocked prefix sum over samples
# ----------------------------------------------------------------------------
def _cox_nll_kernel(n_ref, xw_ref, ev_ref, out_ref,
                    tri_ref, strict_ref, carry_ref, loss_ref):
    i = pl.program_id(0)
    tr = xw_ref.shape[0]                   # rows per chunk (static)

    @pl.when(i == 0)
    def _init():
        # Constant triangles, built once into persistent VMEM scratch.
        r = jax.lax.broadcasted_iota(jnp.int32, (LANE, LANE), 0)
        c = jax.lax.broadcasted_iota(jnp.int32, (LANE, LANE), 1)
        tri_ref[...] = (r <= c).astype(jnp.float32)        # inclusive upper tri
        rr = jax.lax.broadcasted_iota(jnp.int32, (tr, tr), 0)
        cc = jax.lax.broadcasted_iota(jnp.int32, (tr, tr), 1)
        strict_ref[...] = (cc < rr).astype(jnp.float32)    # strict lower tri
        carry_ref[...] = jnp.zeros_like(carry_ref)
        loss_ref[...] = jnp.zeros_like(loss_ref)

    xw = xw_ref[...]                         # (TR, 128) f32; padding holds -1e30
    ev = ev_ref[...].astype(jnp.float32)     # (TR, 128); padding holds 0.0
    ex = jnp.exp(xw)                         # stabilized in wrapper: max(xw)=0

    # Within-row inclusive prefix sum: tri[k, c] = 1 if k <= c  (MXU matmul).
    within = jnp.dot(ex, tri_ref[...], preferred_element_type=jnp.float32)

    # Row sums are already the last column of the inclusive prefix (no reduce).
    rowsum = within[:, LANE - 1:LANE]                               # (TR, 1)

    # Exclusive prefix of row sums inside this chunk (tiny MXU matmul).
    row_prefix = jnp.dot(strict_ref[...], rowsum,
                         preferred_element_type=jnp.float32)        # (TR, 1)

    # Carry of all earlier chunks (exclusive) lives in carry_ref (1,1).
    csum = within + row_prefix + carry_ref[...]                     # (TR, 128)

    # Padded positions contribute exactly 0 (ev == 0, csum >= 1 there).
    terms = xw * ev - ev * jnp.log(csum)                            # (TR, 128)

    # Fold into an (8,128) accumulator with pure VPU adds; defer the scalar
    # reduce to the final step.
    loss_ref[...] = loss_ref[...] + jnp.sum(
        terms.reshape(tr // 8, 8, LANE), axis=0)

    # Chunk carry: last row's exclusive prefix + its own row sum (no reduce).
    carry_ref[...] = (carry_ref[...]
                      + row_prefix[tr - 1:tr, :]
                      + rowsum[tr - 1:tr, :])

    @pl.when(i == pl.num_programs(0) - 1)
    def _finalize():
        n_f = n_ref[0].astype(jnp.float32)
        total = jnp.sum(loss_ref[...])
        out_ref[...] = (-total / n_f).reshape(1, 1)


# ----------------------------------------------------------------------------
# Wrapper reproducing NLog_Likelihood.forward(risk_pred, y, e, model)
# ----------------------------------------------------------------------------
def nlog_likelihood(risk_pred, y, e, model_weights, L2_reg, *, rows_per_chunk=256):
    """risk_pred, y, e: (N, 1). model_weights: dict name -> array.

    Returns (loss, l2_loss), matching the PyTorch module.
    """
    assert rows_per_chunk % 8 == 0
    n = risk_pred.shape[0]

    # TODO(synk): descending sort + gather stay in plain JAX (no Pallas sort).
    order = jnp.argsort(-y[:, 0])
    xw = risk_pred[:, 0][order].astype(jnp.float32)
    ev = e[:, 0][order].astype(jnp.float32)

    # Log-sum-exp stabilization: the shift cancels exactly in
    #   xw*e - e*log(cumsum(exp(xw)))  but keeps exp() from overflowing.
    xw = xw - jnp.max(xw)

    # Pad to whole (rows_per_chunk, 128) chunks; sublane-dense (rows, 128) layout.
    chunk = rows_per_chunk * LANE
    num_chunks = max(1, -(-n // chunk))
    npad = num_chunks * chunk
    n_rows = npad // LANE
    xw_p = (jnp.full((npad,), -1e30, jnp.float32)
            .at[:n].set(xw).reshape(n_rows, LANE))
    ev_p = (jnp.zeros((npad,), jnp.bfloat16)
            .at[:n].set(ev.astype(jnp.bfloat16)).reshape(n_rows, LANE))

    n_arr = jnp.array([n], jnp.int32)

    # TODO(synk): on v7x a two-pass parallel scan could use both TensorCores;
    # kept single-pass sequential carry here (v5e/v6e have one TC anyway).
    grid_spec = pltpu.PrefetchScalarGridSpec(
        num_scalar_prefetch=1,
        grid=(num_chunks,),
        in_specs=[
            pl.BlockSpec((rows_per_chunk, LANE), lambda i, n_ref: (i, 0)),  # xw
            pl.BlockSpec((rows_per_chunk, LANE), lambda i, n_ref: (i, 0)),  # ev
        ],
        out_specs=pl.BlockSpec((1, 1), lambda i, n_ref: (0, 0)),
        scratch_shapes=[
            pltpu.VMEM((LANE, LANE), jnp.float32),                    # tri
            pltpu.VMEM((rows_per_chunk, rows_per_chunk), jnp.float32),  # strict
            pltpu.VMEM((1, 1), jnp.float32),     # carry: sum(exp) of earlier chunks
            pltpu.VMEM((8, LANE), jnp.float32),  # deferred loss accumulator
        ],
    )

    loss = pl.pallas_call(
        _cox_nll_kernel,
        out_shape=jax.ShapeDtypeStruct((1, 1), jnp.float32),
        grid_spec=grid_spec,
        compiler_params=pltpu.CompilerParams(
            dimension_semantics=("arbitrary",)),   # sequential carry across chunks
    )(n_arr, xw_p, ev_p)[0, 0]

    # Regularization(order=2, weight_decay=L2_reg) over 'weight' params.
    # Plain XLA: launch + DMA setup of a pallas_call dwarfs the compute here.
    reg = jnp.float32(0.0)
    for name, w in model_weights.items():
        if "weight" in name:
            wf = w.astype(jnp.float32)
            reg = reg + jnp.sqrt(jnp.sum(wf * wf))
    l2_loss = jnp.float32(L2_reg) * reg

    return loss, l2_loss


# ----------------------------------------------------------------------------
if __name__ == "__main__":
    key = jax.random.PRNGKey(0)
    k1, k2, k3, k4, k5 = jax.random.split(key, 5)

    N = 16
    risk_pred = jax.random.normal(k1, (N, 1), jnp.float32)
    y = jax.random.uniform(k2, (N, 1), jnp.float32) * 10.0          # survival times
    e = (jax.random.uniform(k3, (N, 1)) > 0.5).astype(jnp.float32)  # event flags

    # Deterministic synthetic "model" parameters (a small 2-layer risk net):
    # only entries whose name contains 'weight' enter the L2 term.
    model_weights = {
        "fc1.weight": jax.random.normal(k4, (32, 16), jnp.float32) * 0.1,
        "fc1.bias": jnp.zeros((32,), jnp.float32),
        "fc2.weight": jax.random.normal(k5, (1, 32), jnp.float32) * 0.1,
        "fc2.bias": jnp.zeros((1,), jnp.float32),
    }
    L2_reg = 1e-3

    loss, l2_loss = nlog_likelihood(risk_pred, y, e, model_weights, L2_reg)
    jax.block_until_ready((loss, l2_loss))

    # Pure-JAX reference for correctness check.
    order = jnp.argsort(-y[:, 0])
    xw = risk_pred[:, 0][order]
    ev = e[:, 0][order]
    ref_loss = -jnp.sum(xw * ev - ev * jnp.log(jnp.cumsum(jnp.exp(xw)))) / N
    ref_l2 = jnp.float32(L2_reg) * (
        jnp.linalg.norm(model_weights["fc1.weight"])
        + jnp.linalg.norm(model_weights["fc2.weight"])
    )

    assert jnp.allclose(loss, ref_loss, rtol=1e-5, atol=1e-5), (loss, ref_loss)
    assert jnp.allclose(l2_loss, ref_l2, rtol=1e-5, atol=1e-6), (l2_loss, ref_l2)

    print("KERNEL_OK")
</pallas_src>

<mosaic_0001>
module attributes {stable_mosaic.version = 11 : i64} {
  func.func @_cox_nll_kernel(%arg0: i32, %arg1: memref<1xi32, #tpu.memory_space<smem>>, %arg2: memref<256x128xf32, #tpu.memory_space<vmem>>, %arg3: memref<256x128xbf16, #tpu.memory_space<vmem>>, %arg4: memref<1x1xf32, #tpu.memory_space<vmem>>, %arg5: memref<128x128xf32, #tpu.memory_space<vmem>>, %arg6: memref<256x256xf32, #tpu.memory_space<vmem>>, %arg7: memref<1x1xf32, #tpu.memory_space<vmem>>, %arg8: memref<8x128xf32, #tpu.memory_space<vmem>>) attributes {dimension_semantics = [#tpu.dimension_semantics<arbitrary>], iteration_bounds = array<i64: 1>, scalar_prefetch = 1 : i64, scratch_operands = 4 : i64, tpu.core_type = #tpu.core_type<tc>, window_params = [{transform_indices = @transform_0, window_bounds = array<i64: 256, 128>}, {transform_indices = @transform_1, window_bounds = array<i64: 256, 128>}, {pipeline_mode = #tpu.pipeline_mode<synchronous>, transform_indices = @transform_2, window_bounds = array<i64: 1, 1>}]} {
    %c0_i32 = arith.constant 0 : i32
    %0 = arith.cmpi eq, %arg0, %c0_i32 : i32
    %1 = arith.extui %0 : i1 to i32
    %c0_i32_0 = arith.constant 0 : i32
    %2 = arith.cmpi ne, %1, %c0_i32_0 : i32
    scf.if %2 {
      %35 = tpu.iota {dimensions = array<i32: 0>} : vector<128x128xi32>
      %36 = tpu.iota {dimensions = array<i32: 1>} : vector<128x128xi32>
      %37 = arith.cmpi sle, %35, %36 : vector<128x128xi32>
      %38 = arith.extui %37 : vector<128x128xi1> to vector<128x128xi32>
      %39 = arith.sitofp %38 : vector<128x128xi32> to vector<128x128xf32>
      %c0_22 = arith.constant 0 : index
      %c0_23 = arith.constant 0 : index
      %40 = vector.load %arg5[%c0_22, %c0_23] : memref<128x128xf32, #tpu.memory_space<vmem>>, vector<128x128xf32>
      tpu.vector_store %arg5[%c0_22, %c0_23], %39 {strides = array<i32>} : memref<128x128xf32, #tpu.memory_space<vmem>>, vector<128x128xf32>,
      %41 = tpu.iota {dimensions = array<i32: 0>} : vector<256x256xi32>
      %42 = tpu.iota {dimensions = array<i32: 1>} : vector<256x256xi32>
      %43 = arith.cmpi slt, %42, %41 : vector<256x256xi32>
      %44 = arith.extui %43 : vector<256x256xi1> to vector<256x256xi32>
      %45 = arith.sitofp %44 : vector<256x256xi32> to vector<256x256xf32>
      %c0_24 = arith.constant 0 : index
      %c0_25 = arith.constant 0 : index
      %46 = vector.load %arg6[%c0_24, %c0_25] : memref<256x256xf32, #tpu.memory_space<vmem>>, vector<256x256xf32>
      tpu.vector_store %arg6[%c0_24, %c0_25], %45 {strides = array<i32>} : memref<256x256xf32, #tpu.memory_space<vmem>>, vector<256x256xf32>,
      %cst_26 = arith.constant 0.000000e+00 : f32
      %47 = vector.broadcast %cst_26 : f32 to vector<1x1xf32>
      %c0_27 = arith.constant 0 : index
      %c0_28 = arith.constant 0 : index
      %48 = vector.load %arg7[%c0_27, %c0_28] : memref<1x1xf32, #tpu.memory_space<vmem>>, vector<1x1xf32>
      tpu.vector_store %arg7[%c0_27, %c0_28], %47 {strides = array<i32>} : memref<1x1xf32, #tpu.memory_space<vmem>>, vector<1x1xf32>,
      %cst_29 = arith.constant 0.000000e+00 : f32
      %49 = vector.broadcast %cst_29 : f32 to vector<8x128xf32>
      %c0_30 = arith.constant 0 : index
      %c0_31 = arith.constant 0 : index
      %50 = vector.load %arg8[%c0_30, %c0_31] : memref<8x128xf32, #tpu.memory_space<vmem>>, vector<8x128xf32>
      tpu.vector_store %arg8[%c0_30, %c0_31], %49 {strides = array<i32>} : memref<8x128xf32, #tpu.memory_space<vmem>>, vector<8x128xf32>,
    } else {
    }
    %c0 = arith.constant 0 : index
    %c0_1 = arith.constant 0 : index
    %3 = vector.load %arg2[%c0, %c0_1] : memref<256x128xf32, #tpu.memory_space<vmem>>, vector<256x128xf32>
    %c0_2 = arith.constant 0 : index
    %c0_3 = arith.constant 0 : index
    %4 = vector.load %arg3[%c0_2, %c0_3] : memref<256x128xbf16, #tpu.memory_space<vmem>>, vector<256x128xbf16>
    %5 = arith.extf %4 : vector<256x128xbf16> to vector<256x128xf32>
    %6 = math.exp %3 : vector<256x128xf32>
    %c0_4 = arith.constant 0 : index
    %c0_5 = arith.constant 0 : index
    %7 = vector.load %arg5[%c0_4, %c0_5] : memref<128x128xf32, #tpu.memory_space<vmem>>, vector<128x128xf32>
    %cst = arith.constant dense<0.000000e+00> : vector<256x128xf32>
    %8 = tpu.matmul %6, %7, %cst {dimension_numbers = #tpu.dot_dimension_numbers<[1], [0], [0], [1], [0, 0, 1, 1], [], []>} : vector<256x128xf32>, vector<128x128xf32>, vector<256x128xf32> -> vector<256x128xf32>
    %9 = vector.extract_strided_slice %8 {offsets = [0, 127], sizes = [256, 1], strides = [1, 1]} : vector<256x128xf32> to vector<256x1xf32>
    %c0_6 = arith.constant 0 : index
    %c0_7 = arith.constant 0 : index
    %10 = vector.load %arg6[%c0_6, %c0_7] : memref<256x256xf32, #tpu.memory_space<vmem>>, vector<256x256xf32>
    %cst_8 = arith.constant dense<0.000000e+00> : vector<256x1xf32>
    %11 = tpu.matmul %10, %9, %cst_8 {dimension_numbers = #tpu.dot_dimension_numbers<[1], [0], [0], [1], [0, 0, 1, 1], [], []>} : vector<256x256xf32>, vector<256x1xf32>, vector<256x1xf32> -> vector<256x1xf32>
    %12 = vector.broadcast %11 : vector<256x1xf32> to vector<256x128xf32>
    %13 = arith.addf %8, %12 : vector<256x128xf32>
    %c0_9 = arith.constant 0 : index
    %c0_10 = arith.constant 0 : index
    %14 = vector.load %arg7[%c0_9, %c0_10] : memref<1x1xf32, #tpu.memory_space<vmem>>, vector<1x1xf32>
    %15 = vector.broadcast %14 : vector<1x1xf32> to vector<256x128xf32>
    %16 = arith.addf %13, %15 : vector<256x128xf32>
    %17 = arith.mulf %3, %5 : vector<256x128xf32>
    %18 = math.log %16 : vector<256x128xf32>
    %19 = arith.mulf %5, %18 : vector<256x128xf32>
    %20 = arith.subf %17, %19 : vector<256x128xf32>
    %c0_11 = arith.constant 0 : index
    %c0_12 = arith.constant 0 : index
    %21 = vector.load %arg8[%c0_11, %c0_12] : memref<8x128xf32, #tpu.memory_space<vmem>>, vector<8x128xf32>
    %22 = vector.shape_cast %20 : vector<256x128xf32> to vector<32x8x128xf32>
    %cst_13 = arith.constant dense<0.000000e+00> : vector<8x128xf32>
    %23 = vector.multi_reduction <add>, %22, %cst_13 [0] : vector<32x8x128xf32> to vector<8x128xf32>
    %24 = arith.addf %21, %23 : vector<8x128xf32>
    %c0_14 = arith.constant 0 : index
    %c0_15 = arith.constant 0 : index
    %25 = vector.load %arg8[%c0_14, %c0_15] : memref<8x128xf32, #tpu.memory_space<vmem>>, vector<8x128xf32>
    tpu.vector_store %arg8[%c0_14, %c0_15], %24 {strides = array<i32>} : memref<8x128xf32, #tpu.memory_space<vmem>>, vector<8x128xf32>,
    %c0_16 = arith.constant 0 : index
    %c0_17 = arith.constant 0 : index
    %26 = vector.load %arg7[%c0_16, %c0_17] : memref<1x1xf32, #tpu.memory_space<vmem>>, vector<1x1xf32>
    %27 = vector.extract_strided_slice %11 {offsets = [255, 0], sizes = [1, 1], strides = [1, 1]} : vector<256x1xf32> to vector<1x1xf32>
    %28 = arith.addf %26, %27 : vector<1x1xf32>
    %29 = vector.extract_strided_slice %9 {offsets = [255, 0], sizes = [1, 1], strides = [1, 1]} : vector<256x1xf32> to vector<1x1xf32>
    %30 = arith.addf %28, %29 : vector<1x1xf32>
    %c0_18 = arith.constant 0 : index
    %c0_19 = arith.constant 0 : index
    %31 = vector.load %arg7[%c0_18, %c0_19] : memref<1x1xf32, #tpu.memory_space<vmem>>, vector<1x1xf32>
    tpu.vector_store %arg7[%c0_18, %c0_19], %30 {strides = array<i32>} : memref<1x1xf32, #tpu.memory_space<vmem>>, vector<1x1xf32>,
    %c0_i32_20 = arith.constant 0 : i32
    %32 = arith.cmpi eq, %arg0, %c0_i32_20 : i32
    %33 = arith.extui %32 : i1 to i32
    %c0_i32_21 = arith.constant 0 : i32
    %34 = arith.cmpi ne, %33, %c0_i32_21 : i32
    scf.if %34 {
      %c0_22 = arith.constant 0 : index
      %35 = memref.load %arg1[%c0_22] : memref<1xi32, #tpu.memory_space<smem>>
      %36 = arith.sitofp %35 : i32 to f32
      %c0_23 = arith.constant 0 : index
      %c0_24 = arith.constant 0 : index
      %37 = vector.load %arg8[%c0_23, %c0_24] : memref<8x128xf32, #tpu.memory_space<vmem>>, vector<8x128xf32>
      %38 = vector.shape_cast %37 : vector<8x128xf32> to vector<1x8x128xf32>
      %cst_25 = arith.constant dense<0.000000e+00> : vector<1xf32>
      %39 = vector.multi_reduction <add>, %38, %cst_25 [1, 2] : vector<1x8x128xf32> to vector<1xf32>
      %40 = vector.shape_cast %39 : vector<1xf32> to vector<1x1x1xf32>
      %41 = vector.extract %40[0, 0, 0] : f32 from vector<1x1x1xf32>
      %cst_26 = arith.constant 0.000000e+00 : f32
      %42 = arith.subf %cst_26, %41 : f32
      %43 = arith.divf %42, %36 : f32
      %44 = vector.broadcast %43 : f32 to vector<1x1xf32>
      %c0_27 = arith.constant 0 : index
      %c0_28 = arith.constant 0 : index
      %45 = vector.load %arg4[%c0_27, %c0_28] : memref<1x1xf32, #tpu.memory_space<vmem>>, vector<1x1xf32>
      tpu.vector_store %arg4[%c0_27, %c0_28], %44 {strides = array<i32>} : memref<1x1xf32, #tpu.memory_space<vmem>>, vector<1x1xf32>,
    } else {
    }
    return
  }
  func.func @transform_0(%arg0: i32, %arg1: memref<1xi32, #tpu.memory_space<smem>>) -> (i32, i32) {
    %c0_i32 = arith.constant 0 : i32
    %c0_i32_0 = arith.constant 0 : i32
    return %arg0, %c0_i32 : i32, i32
  }
  func.func @transform_1(%arg0: i32, %arg1: memref<1xi32, #tpu.memory_space<smem>>) -> (i32, i32) {
    %c0_i32 = arith.constant 0 : i32
    %c0_i32_0 = arith.constant 0 : i32
    return %arg0, %c0_i32 : i32, i32
  }
  func.func @transform_2(%arg0: i32, %arg1: memref<1xi32, #tpu.memory_space<smem>>) -> (i32, i32) {
    %c0_i32 = arith.constant 0 : i32
    %c0_i32_0 = arith.constant 0 : i32
    %c0_i32_1 = arith.constant 0 : i32
    return %c0_i32, %c0_i32_0 : i32, i32
  }
}

</mosaic_0001>

<bundles_post_ra>
// kernel: tpu_custom_call.1
= control target key start
LH: loop header
LB: loop body
LE: loop exit
PB: predicated region body
PF: predicated region fallthrough
CT: control target
= control target key end

     0   :  { %9 = vsyncpa [#allocation9], 0  ;;  %s3175_s0 = inlined_call_operand.<no memory space> [shape: s32[1], index: 0, kind: input, shape index: {}]   ;;  %s3176_s1 = inlined_call_operand.hbm [shape: f32[256,128], index: 1, kind: input, shape index: {}]   ;;  %s3177_s2 = inlined_call_operand.hbm [shape: bf16[256,128], index: 2, kind: input, shape index: {}]   ;;  %s3178_s3 = inlined_call_operand.hbm [shape: f32[1,1], index: 3, kind: output, shape index: {}]  }
   0x1   :  { %10 = vsyncpa [#allocation12], 0 }
   0x2   :  { %11 = vsyncpa [#allocation10], 0  ;;  %s2482_s12 = smov [#allocation8]   ;;  %s2410_s16 = scalar_lea.hbm %s3176_s1, 4096 }
   0x3   :  { %s17_s13 = sshll.u32 %s2482_s12, 4  ;;  %p2411_p0 = scmp.ne.s32.totalorder %s3176_s1, %s2410_s16  ;;  %s18_s13 = int_to_ptr.vmem [resolvable:$true] %s17_s13 }
   0x4   :  { %p2414_p1 = scmp.lt.u32.totalorder %s2410_s16, %s3176_s1 }
   0x6   :  { %p2416_p2 = pnand %p2414_p1, %p2411_p0 }
   0x8   :  { %2419 = shalt.err (!%p2416_p2)
}
   0x9   :  { %s2420_s21 = scalar_lea.vmem %s18_s13, 4096  ;;  %p2425_p4 = scmp.lt.s32.totalorder %s18_s13, %s18_s13 }
   0xa   :  { %p2421_p3 = scmp.ne.s32.totalorder %s18_s13, %s2420_s21  ;;  %p2426_p5 = scmp.lt.s32.totalorder %s2420_s21, %s2420_s21 }
   0xc   :  { %p2427_p6 = por %p2426_p5, %p2425_p4 }
   0xe   :  { %p2428_p7 = pnand %p2427_p6, %p2421_p3 }
  0x10   :  { %2431 = shalt.err (!%p2428_p7)
}
  0x11   :  { %s2483_s22 = smov 128   ;;  %s2484_s23 = smov 8  }
  0x12   :  { %23 = dma.hbm_to_vmem [thread:$0]  %s3176_s1, 4096, %s18_s13, [#allocation9], %s2483_s22, %s2483_s22, %s2484_s23  }
  0x13   :  { %s2485_s26 = smov [#allocation11]   ;;  %s2432_s30 = scalar_lea.hbm %s3177_s2, 2048 }
  0x14   :  { %s29_s27 = sshll.u32 %s2485_s26, 4  ;;  %p2433_p8 = scmp.ne.s32.totalorder %s3177_s2, %s2432_s30  ;;  %s30_s27 = int_to_ptr.vmem [resolvable:$true] %s29_s27 }
  0x15   :  { %p2436_p9 = scmp.lt.u32.totalorder %s2432_s30, %s3177_s2 }
  0x17   :  { %p2438_p10 = pnand %p2436_p9, %p2433_p8 }
  0x19   :  { %2441 = shalt.err (!%p2438_p10)
}
  0x1a   :  { %s2442_s8 = scalar_lea.vmem %s30_s27, 2048  ;;  %p2447_p12 = scmp.lt.s32.totalorder %s30_s27, %s30_s27 }
  0x1b   :  { %p2443_p11 = scmp.ne.s32.totalorder %s30_s27, %s2442_s8  ;;  %p2448_p13 = scmp.lt.s32.totalorder %s2442_s8, %s2442_s8 }
  0x1d   :  { %p2449_p0 = por %p2448_p13, %p2447_p12 }
  0x1f   :  { %p2450_p1 = pnand %p2449_p0, %p2443_p11 }
  0x21   :  { %2453 = shalt.err (!%p2450_p1)
}
  0x22   :  { %s2486_s1 = smov 64   ;;  %s2487_s9 = smov 4  }
  0x23   :  { %35 = dma.hbm_to_vmem [thread:$0]  %s3177_s2, 2048, %s30_s27, [#allocation12], %s2486_s1, %s2486_s1, %s2487_s9  }
  0x24   :  { %2476 = dma.done.wait [#allocation9], 4096  }
  0x25   :  { %2477 = vsyncadd [#allocation9], 4294963200  ;;  %v46_v0 = vlaneseq }
  0x26   :  { %2478 = dma.done.wait [#allocation12], 2048  }
  0x27   :  { %2479 = vsyncadd [#allocation12], 4294965248  ;;  %v2540_v1 = vshrl.u32 %v46_v0, 7  ;;  %v2542_v2 = vand.u32 127, %v46_v0  ;;  %v2488_v8 = vmov 1.0|1.0   ;;  %s1698_s14 = scvt.s32.f32 %s3175_s0 }
  0x28   :  { %v405_v11 = vld [vmem:[#allocation8] sm:$0xff]  ;;  %v406_v20 = vld [vmem:[#allocation8 + $0x8] sm:$0xff]  ;;  %v407_v21 = vld [vmem:[#allocation8 + $0x10] sm:$0xff]  ;;  %s2490_s2 = smov 1   ;;  %s2495_s16 = smov [#allocation13]  }
  0x29   :  { %v2545_v3 = vadd.s32 8, %v2540_v1  ;;  %vm65_vm0 = vcmp.le.s32.totalorder %v2540_v1, %v2542_v2  ;;  %v2550_v4 = vadd.s32 16, %v2540_v1  ;;  %v2553_v5 = vadd.s32 24, %v2540_v1  ;;  %v408_v28 = vld [vmem:[#allocation8 + $0x18] sm:$0xff]  ;;  %v409_v29 = vld [vmem:[#allocation8 + $0x20] sm:$0xff]  ;;  %v410_v33 = vld [vmem:[#allocation8 + $0x28] sm:$0xff] }
  0x2a   :  { %v2556_v6 = vadd.s32 32, %v2540_v1  ;;  %v2559_v7 = vadd.s32 40, %v2540_v1  ;;  %v2573_v9 = vadd.s32 48, %v2540_v1  ;;  %v2576_v10 = vadd.s32 56, %v2540_v1  ;;  %v411_v34 = vld [vmem:[#allocation8 + $0x30] sm:$0xff]  ;;  %v412_v37 = vld [vmem:[#allocation8 + $0x38] sm:$0xff] }
  0x2b   :  { %vm66_vm1 = vcmp.le.s32.totalorder %v2545_v3, %v2542_v2  ;;  %vm67_vm2 = vcmp.le.s32.totalorder %v2550_v4, %v2542_v2  ;;  %vm68_vm3 = vcmp.le.s32.totalorder %v2553_v5, %v2542_v2  ;;  %v2581_v12 = vadd.s32 64, %v2540_v1  ;;  %v413_v38 = vld [vmem:[#allocation8 + $0x40] sm:$0xff]  ;;  %v414_v41 = vld [vmem:[#allocation8 + $0x48] sm:$0xff]  ;;  %v415_v43 = vld [vmem:[#allocation8 + $0x50] sm:$0xff]  ;;  %s1722_s17 = sshll.u32 %s2495_s16, 4  ;;  %s1723_s17 = int_to_ptr.vmem [resolvable:$true] %s1722_s17 }
  0x2c   :  { %vm2036_vm4 = vmpackc.low %vm66_vm1, %vm65_vm0  ;;  %vm69_vm6 = vcmp.le.s32.totalorder %v2556_v6, %v2542_v2  ;;  %vm70_vm7 = vcmp.le.s32.totalorder %v2559_v7, %v2542_v2  ;;  %vm71_vm9 = vcmp.le.s32.totalorder %v2573_v9, %v2542_v2  ;;  %vm72_vm10 = vcmp.le.s32.totalorder %v2576_v10, %v2542_v2  ;;  %v416_v47 = vld [vmem:[#allocation8 + $0x58] sm:$0xff]  ;;  %v417_v49 = vld [vmem:[#allocation8 + $0x60] sm:$0xff]  ;;  %s2454_s0 = scalar_lea.vmem %s1723_s17, 16  ;;  %s2458_s21 = scalar_lea.vmem %s1723_s17, 32 }
  0x2d   :  { %2037 = vmatprep.subr.msk.bf16.mxu0 %vm2036_vm4, %v2488_v8  ;;  %vm2040_vm5 = vmpackc.low %vm68_vm3, %vm67_vm2  ;;  %v2588_v13 = vadd.s32 72, %v2540_v1  ;;  %v501_v14 = vmul.f32 1.442695, %v405_v11  ;;  %vm73_vm12 = vcmp.le.s32.totalorder %v2581_v12, %v2542_v2  ;;  %v2597_v15 = vadd.s32 80, %v2540_v1  ;;  %v418_v53 = vld [vmem:[#allocation8 + $0x68] sm:$0xff]  ;;  %v419_v55 = vld [vmem:[#allocation8 + $0x70] sm:$0xff]  ;;  %p2455_p2 = scmp.ne.s32.totalorder %s1723_s17, %s2454_s0  ;;  %p2459_p3 = scmp.lt.s32.totalorder %s1723_s17, %s1723_s17 }
  0x2e   :  { %2039 = vmatpush3.bf16.msk.msra.mxu0 %vm2036_vm4, %v2488_v8  ;;  %vm2044_vm8 = vmpackc.low %vm70_vm7, %vm69_vm6  ;;  %v2600_v16 = vadd.s32 88, %v2540_v1  ;;  %v2613_v18 = vadd.s32 96, %v2540_v1  ;;  %v2616_v19 = vadd.s32 104, %v2540_v1  ;;  %v2627_v23 = vadd.s32 112, %v2540_v1  ;;  %v420_v59 = vld [vmem:[#allocation8 + $0x78] sm:$0xff]  ;;  %v421_v61 = vld [vmem:[#allocation8 + $0x80] sm:$0xff]  ;;  %p2460_p4 = scmp.lt.s32.totalorder %s2458_s21, %s2454_s0 }
  0x2f   :  { %2041 = vmatprep.subr.msk.bf16.mxu0 %vm2040_vm5, %v2488_v8  ;;  %2248 = vpow2.f32 %v501_v14  ;;  %vm2048_vm11 = vmpackc.low %vm72_vm10, %vm71_vm9  ;;  %vm74_vm13 = vcmp.le.s32.totalorder %v2588_v13, %v2542_v2  ;;  %vm75_vm15 = vcmp.le.s32.totalorder %v2597_v15, %v2542_v2  ;;  %v503_v24 = vmul.f32 1.442695, %v406_v20  ;;  %v423_v14 = vld [vmem:[#allocation8 + $0x90] sm:$0xff]  ;;  %v424_v22 = vld [vmem:[#allocation8 + $0x98] sm:$0xff] }
  0x30   :  { %vm2604_vm14 = vmpackc.low %vm74_vm13, %vm73_vm12  ;;  %vm76_vm0 = vcmp.le.s32.totalorder %v2600_v16, %v2542_v2  ;;  %vm77_vm2 = vcmp.le.s32.totalorder %v2613_v18, %v2542_v2  ;;  %vm78_vm3 = vcmp.le.s32.totalorder %v2616_v19, %v2542_v2  ;;  %v2634_v26 = vadd.s32 120, %v2540_v1  ;;  %v426_v30 = vld [vmem:[#allocation8 + $0xa8] sm:$0xff]  ;;  %p2461_p5 = por %p2460_p4, %p2459_p3 }
  0x31   :  { %vm2622_vm1 = vmpackc.low %vm76_vm0, %vm75_vm15  ;;  %v505_v27 = vmul.f32 1.442695, %v407_v21  ;;  %2250 = vpow2.f32 %v503_v24  ;;  %v507_v31 = vmul.f32 1.442695, %v408_v28  ;;  %v509_v32 = vmul.f32 1.442695, %v409_v29 }
  0x32   :  { %2043 = vmatpush3.bf16.msk.msra.mxu0 %vm2040_vm5, %v2488_v8  ;;  %vm2642_vm4 = vmpackc.low %vm78_vm3, %vm77_vm2  ;;  %vm79_vm5 = vcmp.le.s32.totalorder %v2627_v23, %v2542_v2  ;;  %vm80_vm6 = vcmp.le.s32.totalorder %v2634_v26, %v2542_v2  ;;  %v511_v35 = vmul.f32 1.442695, %v410_v33  ;;  %v513_v36 = vmul.f32 1.442695, %v411_v34  ;;  %p2462_p6 = pnand %p2461_p5, %p2455_p2 }
  0x33   :  { %2045 = vmatprep.subr.msk.bf16.mxu0 %vm2044_vm8, %v2488_v8  ;;  %2252 = vpow2.f32 %v505_v27  ;;  %vm2064_vm7 = vmpackc.low %vm80_vm6, %vm79_vm5  ;;  %v515_v39 = vmul.f32 1.442695, %v412_v37  ;;  %v517_v40 = vmul.f32 1.442695, %v413_v38  ;;  %v519_v45 = vmul.f32 1.442695, %v414_v41 }
  0x34   :  { %2254 = vpow2.f32 %v507_v31  ;;  %v521_v46 = vmul.f32 1.442695, %v415_v43  ;;  %v523_v51 = vmul.f32 1.442695, %v416_v47  ;;  %v525_v52 = vmul.f32 1.442695, %v417_v49 }
  0x35   :  { %2256 = vpow2.f32 %v509_v32  ;;  %v527_v57 = vmul.f32 1.442695, %v418_v53  ;;  %v529_v58 = vmul.f32 1.442695, %v419_v55  ;;  %v531_v63 = vmul.f32 1.442695, %v420_v59 }
  0x36   :  { %2047 = vmatpush3.bf16.msk.msra.mxu0 %vm2044_vm8, %v2488_v8  ;;  %2258 = vpow2.f32 %v511_v35  ;;  %v533_v0 = vmul.f32 1.442695, %v421_v61  ;;  %v537_v21 = vmul.f32 1.442695, %v423_v14  ;;  %v539_v28 = vmul.f32 1.442695, %v424_v22 }
  0x37   :  { %2049 = vmatprep.subr.msk.bf16.mxu0 %vm2048_vm11, %v2488_v8  ;;  %2260 = vpow2.f32 %v513_v36  ;;  %v427_v32 = vld [vmem:[#allocation8 + $0xb0] sm:$0xff]  ;;  %v543_v34 = vmul.f32 1.442695, %v426_v30  ;;  %v428_v36 = vld [vmem:[#allocation8 + $0xb8] sm:$0xff]  ;;  %v429_v38 = vld [vmem:[#allocation8 + $0xc0] sm:$0xff]  ;;  %v2489_v22 = vmov 0.0|0.0   ;;  %vm146_vm8 = vcmp.lt.s32.totalorder %v2542_v2, %v2540_v1 }
  0x38   :  { %2262 = vpow2.f32 %v515_v39  ;;  %v545_v35 = vmul.f32 1.442695, %v427_v32  ;;  %v549_v41 = vmul.f32 1.442695, %v429_v38  ;;  %2116 = vmatprep.subr.bf16.mxu1 %v2489_v22  ;;  %vm170_vm9 = vcmp.lt.s32.totalorder %v2542_v2, %v2613_v18 }
  0x39   :  { %v2249_v25 = vpop.eup %2248  ;;  %2264 = vpow2.f32 %v517_v40  ;;  %v547_v40 = vmul.f32 1.442695, %v428_v36  ;;  %vm148_vm10 = vcmp.lt.s32.totalorder %v2542_v2, %v2545_v3  ;;  %vm150_vm12 = vcmp.lt.s32.totalorder %v2542_v2, %v2550_v4 }
  0x3a   :  { %2051 = vmatpush3.bf16.msk.msra.mxu0 %vm2048_vm11, %v2488_v8  ;;  %1988 = vmatprep.mubr.f32.mxu0 %v2249_v25  ;;  %2266 = vpow2.f32 %v519_v45  ;;  %v425_v25 = vld [vmem:[#allocation8 + $0xa0] sm:$0xff]  ;;  %vm172_vm11 = vcmp.lt.s32.totalorder %v2542_v2, %v2616_v19  ;;  %vm174_vm13 = vcmp.lt.s32.totalorder %v2542_v2, %v2627_v23  ;;  %v129_v3 = vadd.s32 128, %v2540_v1 }
  0x3b   :  { %2053 = vmatprep.subr.msk.bf16.mxu0 %vm2604_vm14, %v2488_v8  ;;  %v2251_v42 = vpop.eup %2250  ;;  %2268 = vpow2.f32 %v521_v46  ;;  %v541_v29 = vmul.f32 1.442695, %v425_v25  ;;  %v2829_v18 = vadd.s32 128, %v2542_v2  ;;  %vm176_vm15 = vcmp.lt.s32.totalorder %v2542_v2, %v2634_v26 }
  0x3c   :  { %2270 = vpow2.f32 %v523_v51  ;;  %v130_v4 = vadd.s32 136, %v2540_v1  ;;  %vm156_vm3 = vcmp.lt.s32.totalorder %v2542_v2, %v2559_v7  ;;  %vm158_vm5 = vcmp.lt.s32.totalorder %v2542_v2, %v2573_v9 }
  0x3d   :  { %v2253_v44 = vpop.eup %2252  ;;  %2272 = vpow2.f32 %v525_v52  ;;  %vm179_vm0 = vcmp.lt.s32.totalorder %v2829_v18, %v129_v3  ;;  %v133_v7 = vadd.s32 160, %v2540_v1  ;;  %v134_v9 = vadd.s32 168, %v2540_v1 }
  0x3e   :  { %2055 = vmatpush3.bf16.msk.msra.mxu0 %vm2604_vm14, %v2488_v8  ;;  %v2255_v48 = vpop.eup %2254  ;;  %2274 = vpow2.f32 %v527_v57  ;;  %vm152_vm14 = vcmp.lt.s32.totalorder %v2542_v2, %v2553_v5  ;;  %vm181_vm2 = vcmp.lt.s32.totalorder %v2829_v18, %v130_v4  ;;  %v131_v5 = vadd.s32 144, %v2540_v1 }
  0x3f   :  { %2057 = vmatprep.subr.msk.bf16.mxu0 %vm2622_vm1, %v2488_v8  ;;  %v2257_v50 = vpop.eup %2256  ;;  %2276 = vpow2.f32 %v529_v58  ;;  %v139_v19 = vadd.s32 208, %v2540_v1  ;;  %v142_v23 = vadd.s32 232, %v2540_v1  ;;  %v143_v26 = vadd.s32 240, %v2540_v1 }
  0x40   :  { %v2259_v54 = vpop.eup %2258  ;;  %2278 = vpow2.f32 %v531_v63 }
  0x41   :  { %v2261_v56 = vpop.eup %2260  ;;  %2280 = vpow2.f32 %v533_v0 }
  0x42   :  { %2059 = vmatpush3.bf16.msk.msra.mxu0 %vm2622_vm1, %v2488_v8  ;;  %v2263_v60 = vpop.eup %2262  ;;  %vm154_vm1 = vcmp.lt.s32.totalorder %v2542_v2, %v2556_v6  ;;  %v132_v6 = vadd.s32 152, %v2540_v1 }
  0x43   :  { %2061 = vmatprep.subr.msk.bf16.mxu0 %vm2642_vm4, %v2488_v8  ;;  %v2265_v62 = vpop.eup %2264 }
  0x44   :  { %v2267_v11 = vpop.eup %2266  ;;  %vm185_vm6 = vcmp.lt.s32.totalorder %v2829_v18, %v132_v6 }
  0x45   :  { %v2269_v17 = vpop.eup %2268 }
  0x46   :  { %2063 = vmatpush3.bf16.msk.msra.mxu0 %vm2642_vm4, %v2488_v8  ;;  %v2271_v24 = vpop.eup %2270  ;;  %vm183_vm4 = vcmp.lt.s32.totalorder %v2829_v18, %v131_v5 }
  0x47   :  { %2065 = vmatprep.subr.msk.bf16.mxu0 %vm2064_vm7, %v2488_v8  ;;  %v2273_v27 = vpop.eup %2272 }
  0x48   :  { %v2275_v31 = vpop.eup %2274 }
  0x49   :  { %v2277_v33 = vpop.eup %2276 }
  0x4a   :  { %2067 = vmatpush3.bf16.msk.msra.mxu0 %vm2064_vm7, %v2488_v8  ;;  %v422_v8 = vld [vmem:[#allocation8 + $0x88] sm:$0xff]  ;;  %v2279_v37 = vpop.eup %2278  ;;  %vm160_vm7 = vcmp.lt.s32.totalorder %v2542_v2, %v2576_v10  ;;  %v135_v10 = vadd.s32 176, %v2540_v1 }
  0x4b   :  { %v535_v20 = vmul.f32 1.442695, %v422_v8  ;;  %v2281_v39 = vpop.eup %2280  ;;  %2068 = vmatprep.subr.bf16.mxu0 %v2489_v22 }
  0x4d   :  { %1989 = vmatmul.mubr.f32.vlgmr.msra.gmra.mrb[0].mxu0 %v2251_v42  ;;  %2282 = vpow2.f32 %v535_v20  ;;  %v430_v42 = vld [vmem:[#allocation8 + $0xc8] sm:$0xff] }
  0x4e   :  { %1991 = vmatprep.mubr.f32.mxu0 %v2253_v44  ;;  %2284 = vpow2.f32 %v537_v21  ;;  %v431_v44 = vld [vmem:[#allocation8 + $0xd0] sm:$0xff]  ;;  %v551_v46 = vmul.f32 1.442695, %v430_v42 }
  0x4f   :  { %2286 = vpow2.f32 %v539_v28  ;;  %v553_v47 = vmul.f32 1.442695, %v431_v44 }
  0x50   :  { %2288 = vpow2.f32 %v541_v29 }
  0x51   :  { %1992 = vmatmul.mubr.f32.gmra.mrb[2].mxu0 %v2255_v48  ;;  %2290 = vpow2.f32 %v543_v34  ;;  %v432_v48 = vld [vmem:[#allocation8 + $0xd8] sm:$0xff] }
  0x52   :  { %1994 = vmatprep.mubr.f32.mxu0 %v2257_v50  ;;  %2292 = vpow2.f32 %v545_v35  ;;  %v433_v50 = vld [vmem:[#allocation8 + $0xe0] sm:$0xff]  ;;  %v555_v52 = vmul.f32 1.442695, %v432_v48 }
  0x53   :  { %2294 = vpow2.f32 %v547_v40  ;;  %v557_v53 = vmul.f32 1.442695, %v433_v50 }
  0x54   :  { %2296 = vpow2.f32 %v549_v41 }
  0x55   :  { %1995 = vmatmul.mubr.f32.gmra.mrb[4].mxu0 %v2259_v54  ;;  %2298 = vpow2.f32 %v551_v46  ;;  %v434_v54 = vld [vmem:[#allocation8 + $0xe8] sm:$0xff] }
  0x56   :  { %1997 = vmatprep.mubr.f32.mxu0 %v2261_v56  ;;  %2300 = vpow2.f32 %v553_v47  ;;  %v435_v56 = vld [vmem:[#allocation8 + $0xf0] sm:$0xff]  ;;  %v559_v58 = vmul.f32 1.442695, %v434_v54 }
  0x57   :  { %v2283_v43 = vpop.eup %2282  ;;  %2302 = vpow2.f32 %v555_v52  ;;  %v561_v59 = vmul.f32 1.442695, %v435_v56 }
  0x58   :  { %v2285_v45 = vpop.eup %2284  ;;  %2304 = vpow2.f32 %v557_v53 }
  0x59   :  { %1998 = vmatmul.mubr.f32.gmra.mrb[6].mxu0 %v2263_v60  ;;  %v2287_v49 = vpop.eup %2286  ;;  %v436_v60 = vld [vmem:[#allocation8 + $0xf8] sm:$0xff]  ;;  %2306 = vpow2.f32 %v559_v58 }
  0x5a   :  { %2000 = vmatprep.mubr.f32.mxu0 %v2265_v62  ;;  %v2289_v51 = vpop.eup %2288  ;;  %v563_v63 = vmul.f32 1.442695, %v436_v60  ;;  %2308 = vpow2.f32 %v561_v59 }
  0x5b   :  { %v2291_v55 = vpop.eup %2290 }
  0x5c   :  { %v2293_v57 = vpop.eup %2292  ;;  %2310 = vpow2.f32 %v563_v63 }
  0x5d   :  { %2001 = vmatmul.mubr.f32.gmra.mrb[8].mxu0 %v2267_v11  ;;  %v2295_v61 = vpop.eup %2294 }
  0x5e   :  { %2003 = vmatprep.mubr.f32.mxu0 %v2269_v17  ;;  %v2297_v62 = vpop.eup %2296 }
  0x5f   :  { %v2299_v0 = vpop.eup %2298 }
  0x60   :  { %v2301_v8 = vpop.eup %2300 }
  0x61   :  { %2004 = vmatmul.mubr.f32.gmra.mrb[10].mxu0 %v2271_v24  ;;  %v2303_v11 = vpop.eup %2302 }
  0x62   :  { %2006 = vmatprep.mubr.f32.mxu0 %v2273_v27  ;;  %v2305_v14 = vpop.eup %2304 }
  0x63   :  { %v2307_v17 = vpop.eup %2306 }
  0x64   :  { %v2309_v20 = vpop.eup %2308 }
  0x65   :  { %2007 = vmatmul.mubr.f32.gmra.mrb[12].mxu0 %v2275_v31 }
  0x66   :  { %2009 = vmatprep.mubr.f32.mxu0 %v2277_v33  ;;  %v2311_v21 = vpop.eup %2310 }
  0x69   :  { %2010 = vmatmul.mubr.f32.gmra.mrb[14].mxu0 %v2279_v37 }
  0x6a   :  { %2012 = vmatprep.mubr.f32.mxu0 %v2281_v39 }
  0x6d   :  { %2013 = vmatmul.mubr.f32.gmra.mrb[16].mxu0 %v2283_v43 }
  0x6e   :  { %2015 = vmatprep.mubr.f32.mxu0 %v2285_v45 }
  0x71   :  { %2016 = vmatmul.mubr.f32.gmra.mrb[18].mxu0 %v2287_v49 }
  0x72   :  { %2018 = vmatprep.mubr.f32.mxu0 %v2289_v51 }
  0x75   :  { %2019 = vmatmul.mubr.f32.gmra.mrb[20].mxu0 %v2291_v55 }
  0x76   :  { %2021 = vmatprep.mubr.f32.mxu0 %v2293_v57 }
  0x79   :  { %2022 = vmatmul.mubr.f32.gmra.mrb[22].mxu0 %v2295_v61 }
  0x7a   :  { %2024 = vmatprep.mubr.f32.mxu0 %v2297_v62 }
  0x7d   :  { %2025 = vmatmul.mubr.f32.gmra.mrb[24].mxu0 %v2299_v0 }
  0x7e   :  { %2027 = vmatprep.mubr.f32.mxu0 %v2301_v8 }
  0x81   :  { %2028 = vmatmul.mubr.f32.gmra.mrb[26].mxu0 %v2303_v11 }
  0x82   :  { %2030 = vmatprep.mubr.f32.mxu0 %v2305_v14 }
  0x85   :  { %2031 = vmatmul.mubr.f32.gmra.mrb[28].mxu0 %v2307_v17  ;;  %v2491_v17 = vmov 0.0  }
  0x86   :  { %2033 = vmatprep.mubr.f32.mxu0 %v2309_v20  ;;  %1122 = vmatprep.mubr.f32.mxu1 %v2491_v17 }
  0x89   :  { %2034 = vmatmul.mubr.f32.gmra.mrb[30].mxu0 %v2311_v21 }
  0x8a   :  { %1062 = vmatprep.mubr.f32.mxu0 %v2491_v17 }
 0x120   :  { %v2663_v24 = vpop.f32.mrb[0].mxu0 }
 0x121   :  { %v2665_v25 = vpop.f32.mrb[1].mxu0 }
 0x122   :  { %v2166_v27 = vpack.i.bf16 %v2663_v24, %v2665_v25 }
 0x124   :  { %2167 = vrot.lane.b32.xlu0 %v2166_v27, %s2490_s2  ;;  %v2670_v28 = vpop.f32.mrb[2].mxu0 }
 0x125   :  { %v2672_v29 = vpop.f32.mrb[3].mxu0 }
 0x126   :  { %v2171_v30 = vpack.i.bf16 %v2670_v28, %v2672_v29 }
 0x128   :  { %2172 = vrot.lane.b32.xlu0 %v2171_v30, %s2490_s2  ;;  %v2677_v31 = vpop.f32.mrb[4].mxu0 }
 0x129   :  { %v2679_v32 = vpop.f32.mrb[5].mxu0 }
 0x12a   :  { %v2176_v33 = vpack.i.bf16 %v2677_v31, %v2679_v32 }
 0x12c   :  { %2177 = vrot.lane.b32.xlu1 %v2176_v33, %s2490_s2  ;;  %v2684_v34 = vpop.f32.mrb[6].mxu0 }
 0x12d   :  { %v2686_v35 = vpop.f32.mrb[7].mxu0 }
 0x12e   :  { %v2181_v36 = vpack.i.bf16 %v2684_v34, %v2686_v35 }
 0x130   :  { %2182 = vrot.lane.b32.xlu1 %v2181_v36, %s2490_s2  ;;  %v2691_v37 = vpop.f32.mrb[8].mxu0 }
 0x131   :  { %v2693_v38 = vpop.f32.mrb[9].mxu0 }
 0x132   :  { %v2186_v39 = vpack.i.bf16 %v2691_v37, %v2693_v38 }
 0x134   :  { %2187 = vrot.lane.b32.xlu0 %v2186_v39, %s2490_s2  ;;  %v2698_v40 = vpop.f32.mrb[10].mxu0 }
 0x135   :  { %v2700_v41 = vpop.f32.mrb[11].mxu0 }
 0x136   :  { %v2191_v42 = vpack.i.bf16 %v2698_v40, %v2700_v41 }
 0x138   :  { %2192 = vrot.lane.b32.xlu1 %v2191_v42, %s2490_s2  ;;  %v2705_v43 = vpop.f32.mrb[12].mxu0 }
 0x139   :  { %v2707_v44 = vpop.f32.mrb[13].mxu0 }
 0x13a   :  { %v2196_v45 = vpack.i.bf16 %v2705_v43, %v2707_v44 }
 0x13c   :  { %2197 = vrot.lane.b32.xlu0 %v2196_v45, %s2490_s2  ;;  %v2712_v46 = vpop.f32.mrb[14].mxu0 }
 0x13d   :  { %v2714_v47 = vpop.f32.mrb[15].mxu0 }
 0x13e   :  { %v2201_v48 = vpack.i.bf16 %v2712_v46, %v2714_v47 }
 0x140   :  { %2202 = vrot.lane.b32.xlu1 %v2201_v48, %s2490_s2  ;;  %v2719_v49 = vpop.f32.mrb[16].mxu0 }
 0x141   :  { %v2721_v50 = vpop.f32.mrb[17].mxu0 }
 0x142   :  { %v2206_v51 = vpack.i.bf16 %v2719_v49, %v2721_v50 }
 0x144   :  { %2207 = vrot.lane.b32.xlu0 %v2206_v51, %s2490_s2  ;;  %v2726_v52 = vpop.f32.mrb[18].mxu0 }
 0x145   :  { %v2728_v53 = vpop.f32.mrb[19].mxu0 }
 0x146   :  { %v2211_v54 = vpack.i.bf16 %v2726_v52, %v2728_v53 }
 0x148   :  { %2212 = vrot.lane.b32.xlu1 %v2211_v54, %s2490_s2  ;;  %v2733_v55 = vpop.f32.mrb[20].mxu0 }
 0x149   :  { %v2735_v56 = vpop.f32.mrb[21].mxu0 }
 0x14a   :  { %v2216_v57 = vpack.i.bf16 %v2733_v55, %v2735_v56 }
 0x14c   :  { %2217 = vrot.lane.b32.xlu0 %v2216_v57, %s2490_s2  ;;  %v2740_v58 = vpop.f32.mrb[22].mxu0 }
 0x14d   :  { %v2742_v59 = vpop.f32.mrb[23].mxu0 }
 0x14e   :  { %v2221_v60 = vpack.i.bf16 %v2740_v58, %v2742_v59 }
 0x150   :  { %2222 = vrot.lane.b32.xlu1 %v2221_v60, %s2490_s2  ;;  %v2747_v61 = vpop.f32.mrb[24].mxu0 }
 0x151   :  { %v2749_v62 = vpop.f32.mrb[25].mxu0 }
 0x152   :  { %v2226_v63 = vpack.i.bf16 %v2747_v61, %v2749_v62 }
 0x154   :  { %2227 = vrot.lane.b32.xlu0 %v2226_v63, %s2490_s2  ;;  %v2754_v0 = vpop.f32.mrb[26].mxu0 }
 0x155   :  { %v2756_v8 = vpop.f32.mrb[27].mxu0 }
 0x156   :  { %v2231_v11 = vpack.i.bf16 %v2754_v0, %v2756_v8 }
 0x158   :  { %2232 = vrot.lane.b32.xlu1 %v2231_v11, %s2490_s2  ;;  %v2761_v14 = vpop.f32.mrb[28].mxu0 }
 0x159   :  { %v2764_v20 = vpop.f32.mrb[29].mxu0 }
 0x15a   :  { %v2236_v21 = vpack.i.bf16 %v2761_v14, %v2764_v20 }
 0x15c   :  { %2237 = vrot.lane.b32.xlu0 %v2236_v21, %s2490_s2  ;;  %v2770_v27 = vpop.f32.mrb[30].mxu0 }
 0x15d   :  { %v2772_v30 = vpop.f32.mrb[31].mxu0 }
 0x15e   :  { %v2241_v33 = vpack.i.bf16 %v2770_v27, %v2772_v30 }
 0x160   :  { %2242 = vrot.lane.b32.xlu1 %v2241_v33, %s2490_s2 }
 0x196   :  { %v2168_v36 = vpop.permute.xlu0 %2167 }
 0x197   :  { %v2170_v39 = vunpack.i.h.bf16 %v2168_v36  ;;  %v2169_v42 = vunpack.i.l.bf16 %v2168_v36 }
 0x199   :  { %v2069_v45 = vpack.c.bf16 %v2170_v39, %v2169_v42 }
 0x19a   :  { %v2173_v48 = vpop.permute.xlu0 %2172 }
 0x19b   :  { %v2175_v51 = vunpack.i.h.bf16 %v2173_v48  ;;  %v2174_v54 = vunpack.i.l.bf16 %v2173_v48  ;;  %2070 = vmatpush1.bf16.msra.mxu0 %v2069_v45  ;;  %2132 = vmatpush1.bf16.msra.mxu1 %v2069_v45 }
 0x19c   :  { %2071 = vmatprep.subr.bf16.mxu0 %v2489_v22  ;;  %2117 = vmatprep.subr.bf16.mxu1 %v2489_v22 }
 0x19d   :  { %v2072_v57 = vpack.c.bf16 %v2175_v51, %v2174_v54 }
 0x19e   :  { %v2178_v60 = vpop.permute.xlu1 %2177 }
 0x19f   :  { %v2180_v63 = vunpack.i.h.bf16 %v2178_v60  ;;  %v2179_v11 = vunpack.i.l.bf16 %v2178_v60  ;;  %2073 = vmatpush1.bf16.msra.mxu0 %v2072_v57  ;;  %2133 = vmatpush1.bf16.msra.mxu1 %v2072_v57  ;;  %v2492_v57 = vmov 0  }
 0x1a0   :  { %2074 = vmatprep.subr.bf16.mxu0 %v2489_v22  ;;  %2118 = vmatprep.subr.bf16.mxu1 %v2489_v22 }
 0x1a1   :  { %v2075_v21 = vpack.c.bf16 %v2180_v63, %v2179_v11  ;;  %2246 = vset.pattern.permute.xlu0 %v2492_v57  ;;  %2247 = vset.pattern.permute.xlu1 %v2492_v57 }
 0x1a2   :  { %v2183_v33 = vpop.permute.xlu1 %2182 }
 0x1a3   :  { %v2185_v36 = vunpack.i.h.bf16 %v2183_v33  ;;  %v2184_v39 = vunpack.i.l.bf16 %v2183_v33  ;;  %2076 = vmatpush1.bf16.msra.mxu0 %v2075_v21  ;;  %2134 = vmatpush1.bf16.msra.mxu1 %v2075_v21 }
 0x1a4   :  { %2077 = vmatprep.subr.bf16.mxu0 %v2489_v22  ;;  %2119 = vmatprep.subr.bf16.mxu1 %v2489_v22 }
 0x1a5   :  { %v2078_v42 = vpack.c.bf16 %v2185_v36, %v2184_v39 }
 0x1a6   :  { %v2188_v45 = vpop.permute.xlu0 %2187 }
 0x1a7   :  { %v2190_v48 = vunpack.i.h.bf16 %v2188_v45  ;;  %v2189_v51 = vunpack.i.l.bf16 %v2188_v45  ;;  %2079 = vmatpush1.bf16.msra.mxu0 %v2078_v42  ;;  %2135 = vmatpush1.bf16.msra.mxu1 %v2078_v42 }
 0x1a8   :  { %2080 = vmatprep.subr.bf16.mxu0 %v2489_v22  ;;  %2120 = vmatprep.subr.bf16.mxu1 %v2489_v22 }
 0x1a9   :  { %v2081_v54 = vpack.c.bf16 %v2190_v48, %v2189_v51 }
 0x1aa   :  { %v2193_v60 = vpop.permute.xlu1 %2192 }
 0x1ab   :  { %v2195_v63 = vunpack.i.h.bf16 %v2193_v60  ;;  %v2194_v11 = vunpack.i.l.bf16 %v2193_v60  ;;  %2082 = vmatpush1.bf16.msra.mxu0 %v2081_v54  ;;  %2136 = vmatpush1.bf16.msra.mxu1 %v2081_v54 }
 0x1ac   :  { %2083 = vmatprep.subr.bf16.mxu0 %v2489_v22  ;;  %2121 = vmatprep.subr.bf16.mxu1 %v2489_v22 }
 0x1ad   :  { %v2084_v21 = vpack.c.bf16 %v2195_v63, %v2194_v11 }
 0x1ae   :  { %v2198_v33 = vpop.permute.xlu0 %2197 }
 0x1af   :  { %v2200_v36 = vunpack.i.h.bf16 %v2198_v33  ;;  %v2199_v39 = vunpack.i.l.bf16 %v2198_v33  ;;  %2085 = vmatpush1.bf16.msra.mxu0 %v2084_v21  ;;  %2137 = vmatpush1.bf16.msra.mxu1 %v2084_v21 }
 0x1b0   :  { %2086 = vmatprep.subr.bf16.mxu0 %v2489_v22  ;;  %2122 = vmatprep.subr.bf16.mxu1 %v2489_v22 }
 0x1b1   :  { %v2087_v42 = vpack.c.bf16 %v2200_v36, %v2199_v39 }
 0x1b2   :  { %v2203_v45 = vpop.permute.xlu1 %2202 }
 0x1b3   :  { %v2205_v48 = vunpack.i.h.bf16 %v2203_v45  ;;  %v2204_v51 = vunpack.i.l.bf16 %v2203_v45  ;;  %2088 = vmatpush1.bf16.msra.mxu0 %v2087_v42  ;;  %2138 = vmatpush1.bf16.msra.mxu1 %v2087_v42 }
 0x1b4   :  { %2089 = vmatprep.subr.bf16.mxu0 %v2489_v22  ;;  %2123 = vmatprep.subr.bf16.mxu1 %v2489_v22 }
 0x1b5   :  { %v2090_v54 = vpack.c.bf16 %v2205_v48, %v2204_v51 }
 0x1b6   :  { %v2208_v57 = vpop.permute.xlu0 %2207 }
 0x1b7   :  { %v2210_v60 = vunpack.i.h.bf16 %v2208_v57  ;;  %v2209_v63 = vunpack.i.l.bf16 %v2208_v57  ;;  %2091 = vmatpush1.bf16.msra.mxu0 %v2090_v54  ;;  %2139 = vmatpush1.bf16.msra.mxu1 %v2090_v54 }
 0x1b8   :  { %2092 = vmatprep.subr.bf16.mxu0 %v2489_v22  ;;  %2124 = vmatprep.subr.bf16.mxu1 %v2489_v22 }
 0x1b9   :  { %v2093_v11 = vpack.c.bf16 %v2210_v60, %v2209_v63 }
 0x1ba   :  { %v2213_v21 = vpop.permute.xlu1 %2212 }
 0x1bb   :  { %v2215_v33 = vunpack.i.h.bf16 %v2213_v21  ;;  %v2214_v36 = vunpack.i.l.bf16 %v2213_v21  ;;  %2094 = vmatpush1.bf16.msra.mxu0 %v2093_v11  ;;  %2140 = vmatpush1.bf16.msra.mxu1 %v2093_v11 }
 0x1bc   :  { %2095 = vmatprep.subr.bf16.mxu0 %v2489_v22  ;;  %2125 = vmatprep.subr.bf16.mxu1 %v2489_v22 }
 0x1bd   :  { %v2096_v39 = vpack.c.bf16 %v2215_v33, %v2214_v36 }
 0x1be   :  { %v2218_v42 = vpop.permute.xlu0 %2217 }
 0x1bf   :  { %v2220_v45 = vunpack.i.h.bf16 %v2218_v42  ;;  %v2219_v48 = vunpack.i.l.bf16 %v2218_v42  ;;  %2097 = vmatpush1.bf16.msra.mxu0 %v2096_v39  ;;  %2141 = vmatpush1.bf16.msra.mxu1 %v2096_v39 }
 0x1c0   :  { %2098 = vmatprep.subr.bf16.mxu0 %v2489_v22  ;;  %2126 = vmatprep.subr.bf16.mxu1 %v2489_v22 }
 0x1c1   :  { %v2099_v51 = vpack.c.bf16 %v2220_v45, %v2219_v48 }
 0x1c2   :  { %v2223_v54 = vpop.permute.xlu1 %2222 }
 0x1c3   :  { %v2225_v57 = vunpack.i.h.bf16 %v2223_v54  ;;  %v2224_v60 = vunpack.i.l.bf16 %v2223_v54  ;;  %2100 = vmatpush1.bf16.msra.mxu0 %v2099_v51  ;;  %2142 = vmatpush1.bf16.msra.mxu1 %v2099_v51 }
 0x1c4   :  { %2101 = vmatprep.subr.bf16.mxu0 %v2489_v22  ;;  %2127 = vmatprep.subr.bf16.mxu1 %v2489_v22 }
 0x1c5   :  { %v2102_v63 = vpack.c.bf16 %v2225_v57, %v2224_v60 }
 0x1c6   :  { %v2228_v11 = vpop.permute.xlu0 %2227 }
 0x1c7   :  { %v2230_v21 = vunpack.i.h.bf16 %v2228_v11  ;;  %v2229_v33 = vunpack.i.l.bf16 %v2228_v11  ;;  %2103 = vmatpush1.bf16.msra.mxu0 %v2102_v63  ;;  %2143 = vmatpush1.bf16.msra.mxu1 %v2102_v63 }
 0x1c8   :  { %2104 = vmatprep.subr.bf16.mxu0 %v2489_v22  ;;  %2128 = vmatprep.subr.bf16.mxu1 %v2489_v22 }
 0x1c9   :  { %v2105_v36 = vpack.c.bf16 %v2230_v21, %v2229_v33 }
 0x1ca   :  { %v2233_v39 = vpop.permute.xlu1 %2232 }
 0x1cb   :  { %v2235_v42 = vunpack.i.h.bf16 %v2233_v39  ;;  %v2234_v45 = vunpack.i.l.bf16 %v2233_v39  ;;  %2106 = vmatpush1.bf16.msra.mxu0 %v2105_v36  ;;  %2144 = vmatpush1.bf16.msra.mxu1 %v2105_v36  ;;  %v2493_v36 = vmov 1.0  }
 0x1cc   :  { %2107 = vmatprep.subr.bf16.mxu0 %v2489_v22  ;;  %2129 = vmatprep.subr.bf16.mxu1 %v2489_v22 }
 0x1cd   :  { %v2108_v48 = vpack.c.bf16 %v2235_v42, %v2234_v45 }
 0x1ce   :  { %v2238_v51 = vpop.permute.xlu0 %2237 }
 0x1cf   :  { %v2240_v54 = vunpack.i.h.bf16 %v2238_v51  ;;  %v2239_v57 = vunpack.i.l.bf16 %v2238_v51  ;;  %2109 = vmatpush1.bf16.msra.mxu0 %v2108_v48  ;;  %2145 = vmatpush1.bf16.msra.mxu1 %v2108_v48 }
 0x1d0   :  { %2110 = vmatprep.subr.bf16.mxu0 %v2489_v22  ;;  %2130 = vmatprep.subr.bf16.mxu1 %v2489_v22 }
 0x1d1   :  { %v2111_v60 = vpack.c.bf16 %v2240_v54, %v2239_v57 }
 0x1d2   :  { %v2243_v63 = vpop.permute.xlu1 %2242 }
 0x1d3   :  { %v2245_v11 = vunpack.i.h.bf16 %v2243_v63  ;;  %v2244_v21 = vunpack.i.l.bf16 %v2243_v63  ;;  %2112 = vmatpush1.bf16.msra.mxu0 %v2111_v60  ;;  %2146 = vmatpush1.bf16.msra.mxu1 %v2111_v60 }
 0x1d4   :  { %2113 = vmatprep.subr.bf16.mxu0 %v2489_v22  ;;  %2131 = vmatprep.subr.bf16.mxu1 %v2489_v22  ;;  %v144_v22 = vadd.s32 248, %v2540_v1 }
 0x1d5   :  { %v2114_v33 = vpack.c.bf16 %v2245_v11, %v2244_v21 }
 0x1d7   :  { %2115 = vmatpush1.bf16.msra.mxu0 %v2114_v33  ;;  %2147 = vmatpush1.bf16.msra.mxu1 %v2114_v33 }
 0x1da   :  { %1876 = vmatmul.mubr.msk.f32.vlgmr.msra.gmra.mrb[32].mxu0 %vm146_vm8, %v2493_v36  ;;  %1888 = vmatmul.mubr.msk.f32.vlgmr.msra.gmra.mrb[0].mxu1 %vm170_vm9, %v2493_v36  ;;  %vm187_vm8 = vcmp.lt.s32.totalorder %v2829_v18, %v133_v7  ;;  %vm162_vm9 = vcmp.lt.s32.totalorder %v2542_v2, %v2581_v12  ;;  %v136_v12 = vadd.s32 184, %v2540_v1 }
 0x1db   :  { %1067 = vmatprep.mubr.f32.mxu0 %v2491_v17  ;;  %1127 = vmatprep.mubr.f32.mxu1 %v2491_v17 }
 0x1de   :  { %1877 = vmatmul.mubr.msk.f32.gmra.mrb[34].mxu0 %vm148_vm10, %v2493_v36  ;;  %1889 = vmatmul.mubr.msk.f32.gmra.mrb[2].mxu1 %vm172_vm11, %v2493_v36  ;;  %vm189_vm10 = vcmp.lt.s32.totalorder %v2829_v18, %v134_v9  ;;  %vm164_vm11 = vcmp.lt.s32.totalorder %v2542_v2, %v2588_v13  ;;  %v137_v13 = vadd.s32 192, %v2540_v1 }
 0x1df   :  { %1072 = vmatprep.mubr.f32.mxu0 %v2491_v17  ;;  %1132 = vmatprep.mubr.f32.mxu1 %v2491_v17 }
 0x1e2   :  { %1878 = vmatmul.mubr.msk.f32.gmra.mrb[36].mxu0 %vm150_vm12, %v2493_v36  ;;  %1890 = vmatmul.mubr.msk.f32.gmra.mrb[4].mxu1 %vm174_vm13, %v2493_v36  ;;  %vm191_vm12 = vcmp.lt.s32.totalorder %v2829_v18, %v135_v10  ;;  %vm166_vm13 = vcmp.lt.s32.totalorder %v2542_v2, %v2597_v15  ;;  %v138_v15 = vadd.s32 200, %v2540_v1 }
 0x1e3   :  { %1077 = vmatprep.mubr.f32.mxu0 %v2491_v17  ;;  %1137 = vmatprep.mubr.f32.mxu1 %v2491_v17 }
 0x1e6   :  { %1879 = vmatmul.mubr.msk.f32.gmra.mrb[38].mxu0 %vm152_vm14, %v2493_v36  ;;  %1891 = vmatmul.mubr.msk.f32.gmra.mrb[6].mxu1 %vm176_vm15, %v2493_v36  ;;  %vm193_vm14 = vcmp.lt.s32.totalorder %v2829_v18, %v136_v12  ;;  %vm168_vm15 = vcmp.lt.s32.totalorder %v2542_v2, %v2600_v16  ;;  %v140_v2 = vadd.s32 216, %v2540_v1  ;;  %v141_v16 = vadd.s32 224, %v2540_v1 }
 0x1e7   :  { %1082 = vmatprep.mubr.f32.mxu0 %v2491_v17  ;;  %1892 = vmatprep.mubr.msk.f32.mxu1 %vm179_vm0, %v2493_v36  ;;  %vm195_vm0 = vcmp.lt.s32.totalorder %v2829_v18, %v137_v13 }
 0x1ea   :  { %1880 = vmatmul.mubr.msk.f32.gmra.mrb[40].mxu0 %vm154_vm1, %v2493_v36  ;;  %1143 = vmatmul.mubr.f32.gmra.mrb[8].mxu1 %v2493_v36  ;;  %vm197_vm1 = vcmp.lt.s32.totalorder %v2829_v18, %v138_v15 }
 0x1eb   :  { %1087 = vmatprep.mubr.f32.mxu0 %v2491_v17  ;;  %1893 = vmatprep.mubr.msk.f32.mxu1 %vm181_vm2, %v2493_v36  ;;  %vm199_vm2 = vcmp.lt.s32.totalorder %v2829_v18, %v139_v19 }
 0x1ee   :  { %1881 = vmatmul.mubr.msk.f32.gmra.mrb[42].mxu0 %vm156_vm3, %v2493_v36  ;;  %1148 = vmatmul.mubr.f32.gmra.mrb[10].mxu1 %v2493_v36  ;;  %vm201_vm3 = vcmp.lt.s32.totalorder %v2829_v18, %v140_v2 }
 0x1ef   :  { %1092 = vmatprep.mubr.f32.mxu0 %v2491_v17  ;;  %1894 = vmatprep.mubr.msk.f32.mxu1 %vm183_vm4, %v2493_v36  ;;  %vm203_vm4 = vcmp.lt.s32.totalorder %v2829_v18, %v141_v16 }
 0x1f2   :  { %1882 = vmatmul.mubr.msk.f32.gmra.mrb[44].mxu0 %vm158_vm5, %v2493_v36  ;;  %1153 = vmatmul.mubr.f32.gmra.mrb[12].mxu1 %v2493_v36  ;;  %vm205_vm5 = vcmp.lt.s32.totalorder %v2829_v18, %v142_v23 }
 0x1f3   :  { %1097 = vmatprep.mubr.f32.mxu0 %v2491_v17  ;;  %1895 = vmatprep.mubr.msk.f32.mxu1 %vm185_vm6, %v2493_v36  ;;  %vm207_vm6 = vcmp.lt.s32.totalorder %v2829_v18, %v143_v26 }
 0x1f6   :  { %1883 = vmatmul.mubr.msk.f32.gmra.mrb[46].mxu0 %vm160_vm7, %v2493_v36  ;;  %1158 = vmatmul.mubr.f32.gmra.mrb[14].mxu1 %v2493_v36  ;;  %vm209_vm7 = vcmp.lt.s32.totalorder %v2829_v18, %v144_v22 }
 0x1f7   :  { %1102 = vmatprep.mubr.f32.mxu0 %v2491_v17  ;;  %1896 = vmatprep.mubr.msk.f32.mxu1 %vm187_vm8, %v2493_v36  ;;  %vm402_vm8 = vcmask 0  }
 0x1f8   :  { %403 = vst.msk [vmem:[#allocation4] sm:$0x1] %vm402_vm8, %v2491_v17 }
 0x1fa   :  { %1884 = vmatmul.mubr.msk.f32.gmra.mrb[48].mxu0 %vm162_vm9, %v2493_v36  ;;  %1163 = vmatmul.mubr.f32.gmra.mrb[16].mxu1 %v2493_v36 }
 0x1fb   :  { %1107 = vmatprep.mubr.f32.mxu0 %v2491_v17  ;;  %1897 = vmatprep.mubr.msk.f32.mxu1 %vm189_vm10, %v2493_v36 }
 0x1fe   :  { %1885 = vmatmul.mubr.msk.f32.gmra.mrb[50].mxu0 %vm164_vm11, %v2493_v36  ;;  %1168 = vmatmul.mubr.f32.gmra.mrb[18].mxu1 %v2493_v36 }
 0x1ff   :  { %1112 = vmatprep.mubr.f32.mxu0 %v2491_v17  ;;  %1898 = vmatprep.mubr.msk.f32.mxu1 %vm191_vm12, %v2493_v36  ;;  %v1780_v51 = vld [vmem:[#allocation4] ss:$0 sm:$0xff] }
 0x202   :  { %1886 = vmatmul.mubr.msk.f32.gmra.mrb[52].mxu0 %vm166_vm13, %v2493_v36  ;;  %1173 = vmatmul.mubr.f32.gmra.mrb[20].mxu1 %v2493_v36 }
 0x203   :  { %1117 = vmatprep.mubr.f32.mxu0 %v2491_v17  ;;  %1899 = vmatprep.mubr.msk.f32.mxu1 %vm193_vm14, %v2493_v36 }
 0x206   :  { %1887 = vmatmul.mubr.msk.f32.gmra.mrb[54].mxu0 %vm168_vm15, %v2493_v36  ;;  %1178 = vmatmul.mubr.f32.gmra.mrb[22].mxu1 %v2493_v36 }
 0x207   :  { %1900 = vmatprep.mubr.msk.f32.mxu1 %vm195_vm0, %v2493_v36 }
 0x20a   :  { %1183 = vmatmul.mubr.f32.gmra.mrb[24].mxu1 %v2493_v36 }
 0x20b   :  { %1901 = vmatprep.mubr.msk.f32.mxu1 %vm197_vm1, %v2493_v36 }
 0x20e   :  { %1188 = vmatmul.mubr.f32.gmra.mrb[26].mxu1 %v2493_v36 }
 0x20f   :  { %1902 = vmatprep.mubr.msk.f32.mxu1 %vm199_vm2, %v2493_v36 }
 0x212   :  { %1193 = vmatmul.mubr.f32.gmra.mrb[28].mxu1 %v2493_v36 }
 0x213   :  { %1903 = vmatprep.mubr.msk.f32.mxu1 %vm201_vm3, %v2493_v36 }
 0x216   :  { %1198 = vmatmul.mubr.f32.gmra.mrb[30].mxu1 %v2493_v36 }
 0x217   :  { %1904 = vmatprep.mubr.msk.f32.mxu1 %vm203_vm4, %v2493_v36 }
 0x21a   :  { %1203 = vmatmul.mubr.f32.gmra.mrb[32].mxu1 %v2493_v36 }
 0x21b   :  { %1905 = vmatprep.mubr.msk.f32.mxu1 %vm205_vm5, %v2493_v36 }
 0x21e   :  { %1208 = vmatmul.mubr.f32.gmra.mrb[34].mxu1 %v2493_v36 }
 0x21f   :  { %1906 = vmatprep.mubr.msk.f32.mxu1 %vm207_vm6, %v2493_v36 }
 0x222   :  { %1213 = vmatmul.mubr.f32.gmra.mrb[36].mxu1 %v2493_v36 }
 0x223   :  { %1907 = vmatprep.mubr.msk.f32.mxu1 %vm209_vm7, %v2493_v36 }
 0x226   :  { %1218 = vmatmul.mubr.f32.gmra.mrb[38].mxu1 %v2493_v36 }
 0x2ad   :  { %v1064_v39 = vpop.f32.mrb[32].mxu0  ;;  %v1124_v42 = vpop.f32.mrb[0].mxu1 }
 0x2ae   :  { %1225 = vperm.xlu0 %2246, %v1064_v39   ;;  %v1066_v45 = vpop.f32.mrb[33].mxu0  ;;  %v1126_v48 = vpop.f32.mrb[1].mxu1 }
 0x2b1   :  { %v1069_v54 = vpop.f32.mrb[34].mxu0  ;;  %v1129_v57 = vpop.f32.mrb[2].mxu1 }
 0x2b2   :  { %1230 = vperm.xlu1 %2247, %v1069_v54   ;;  %v1071_v60 = vpop.f32.mrb[35].mxu0  ;;  %1422 = vperm.xlu0 %2246, %v1780_v51   ;;  %v1131_v63 = vpop.f32.mrb[3].mxu1 }
 0x2b5   :  { %v1074_v11 = vpop.f32.mrb[36].mxu0  ;;  %v1134_v21 = vpop.f32.mrb[4].mxu1 }
 0x2b6   :  { %1235 = vperm.xlu1 %2247, %v1074_v11   ;;  %v1076_v33 = vpop.f32.mrb[37].mxu0  ;;  %v1136_v36 = vpop.f32.mrb[5].mxu1 }
 0x2b9   :  { %v1079_v3 = vpop.f32.mrb[38].mxu0  ;;  %v1139_v18 = vpop.f32.mrb[6].mxu1 }
 0x2ba   :  { %1240 = vperm.xlu1 %2247, %v1079_v3   ;;  %v1081_v17 = vpop.f32.mrb[39].mxu0  ;;  %v1141_v4 = vpop.f32.mrb[7].mxu1 }
 0x2bd   :  { %v1084_v5 = vpop.f32.mrb[40].mxu0  ;;  %v1144_v6 = vpop.f32.mrb[8].mxu1 }
 0x2be   :  { %v1086_v7 = vpop.f32.mrb[41].mxu0  ;;  %1245 = vperm.xlu0 %2246, %v1084_v5   ;;  %v1146_v9 = vpop.f32.mrb[9].mxu1 }
 0x2c1   :  { %v1089_v10 = vpop.f32.mrb[42].mxu0  ;;  %v1149_v12 = vpop.f32.mrb[10].mxu1 }
 0x2c2   :  { %1250 = vperm.xlu1 %2247, %v1089_v10   ;;  %v1091_v13 = vpop.f32.mrb[43].mxu0  ;;  %v1151_v15 = vpop.f32.mrb[11].mxu1 }
 0x2c5   :  { %v1094_v19 = vpop.f32.mrb[44].mxu0  ;;  %v1154_v2 = vpop.f32.mrb[12].mxu1 }
 0x2c6   :  { %v1096_v16 = vpop.f32.mrb[45].mxu0  ;;  %1255 = vperm.xlu0 %2246, %v1094_v19   ;;  %v1156_v23 = vpop.f32.mrb[13].mxu1 }
 0x2c9   :  { %v1099_v26 = vpop.f32.mrb[46].mxu0  ;;  %v1159_v22 = vpop.f32.mrb[14].mxu1 }
 0x2ca   :  { %1260 = vperm.xlu1 %2247, %v1099_v26   ;;  %v1101_v39 = vpop.f32.mrb[47].mxu0  ;;  %v1161_v45 = vpop.f32.mrb[15].mxu1 }
 0x2cd   :  { %v1104_v48 = vpop.f32.mrb[48].mxu0  ;;  %v1164_v51 = vpop.f32.mrb[16].mxu1 }
 0x2ce   :  { %v1106_v54 = vpop.f32.mrb[49].mxu0  ;;  %1265 = vperm.xlu0 %2246, %v1104_v48   ;;  %v1166_v60 = vpop.f32.mrb[17].mxu1 }
 0x2cf   :  { %v2494_v54 = vmov 1966171168  }
 0x2d0   :  { %v1654_v60 = vunpack.c.l.s4 %v2494_v54 }
 0x2d1   :  { %v1109_v63 = vpop.f32.mrb[50].mxu0  ;;  %v1169_v11 = vpop.f32.mrb[18].mxu1 }
 0x2d2   :  { %1270 = vperm.xlu1 %2247, %v1109_v63   ;;  %v1111_v33 = vpop.f32.mrb[51].mxu0  ;;  %v1171_v36 = vpop.f32.mrb[19].mxu1 }
 0x2d5   :  { %v1114_v3 = vpop.f32.mrb[52].mxu0  ;;  %v1174_v17 = vpop.f32.mrb[20].mxu1 }
 0x2d6   :  { %v1116_v4 = vpop.f32.mrb[53].mxu0  ;;  %1275 = vperm.xlu0 %2246, %v1114_v3   ;;  %v1176_v5 = vpop.f32.mrb[21].mxu1 }
 0x2d9   :  { %v1119_v7 = vpop.f32.mrb[54].mxu0  ;;  %v1179_v9 = vpop.f32.mrb[22].mxu1 }
 0x2da   :  { %1280 = vperm.xlu1 %2247, %v1119_v7   ;;  %v1121_v10 = vpop.f32.mrb[55].mxu0  ;;  %1285 = vperm.xlu0 %2246, %v1124_v42   ;;  %v1181_v13 = vpop.f32.mrb[23].mxu1 }
 0x2dd   :  { %v1184_v15 = vpop.f32.mrb[24].mxu1 }
 0x2de   :  { %1290 = vperm.xlu1 %2247, %v1129_v57   ;;  %1295 = vperm.xlu0 %2246, %v1134_v21   ;;  %v1186_v19 = vpop.f32.mrb[25].mxu1  ;;  %v1655_v21 = vunpack.c.0.s8 %v1654_v60  ;;  %v1845_v60 = vld [vmem:[#allocation11 + $0x8] sm:$0xff]  }
 0x2e1   :  { %v1189_v16 = vpop.f32.mrb[26].mxu1 }
 0x2e2   :  { %1300 = vperm.xlu1 %2247, %v1139_v18   ;;  %1305 = vperm.xlu0 %2246, %v1144_v6   ;;  %v1191_v23 = vpop.f32.mrb[27].mxu1  ;;  %v2939_v6 = vsub.s32 %v1655_v21, %v2540_v1 }
 0x2e5   :  { %v1194_v26 = vpop.f32.mrb[28].mxu1 }
 0x2e6   :  { %1310 = vperm.xlu1 %2247, %v1149_v12   ;;  %1315 = vperm.xlu0 %2246, %v1154_v2   ;;  %v1196_v39 = vpop.f32.mrb[29].mxu1  ;;  %v1671_v12 = vcombine.high %v2770_v27, %v2770_v27 }
 0x2e9   :  { %v1199_v45 = vpop.f32.mrb[30].mxu1 }
 0x2ea   :  { %1320 = vperm.xlu1 %2247, %v1159_v22   ;;  %1325 = vperm.xlu0 %2246, %v1164_v51   ;;  %v1201_v48 = vpop.f32.mrb[31].mxu1  ;;  %v1678_v51 = vrot.slane %v1671_v12, %v2939_v6  ;;  %v2379_v12 = vld [vmem:[#allocation8 + $0x8] sm:$0xff] }
 0x2ec   :  { %v1679_v36 = vcombine.high %v1678_v51, %v1678_v51 }
 0x2ed   :  { %v1204_v42 = vpop.f32.mrb[32].mxu1 }
 0x2ee   :  { %1330 = vperm.xlu1 %2247, %v1169_v11   ;;  %1335 = vperm.xlu0 %2246, %v1174_v17   ;;  %v1206_v57 = vpop.f32.mrb[33].mxu1  ;;  %v1686_v1 = vrot.slane %v1679_v36, %v2939_v6 }
 0x2ef   :  { %v2378_v57 = vld [vmem:[#allocation8] sm:$0xff] }
 0x2f0   :  { %v1687_v3 = vcombine.high %v1686_v1, %v1686_v1 }
 0x2f1   :  { %v1209_v63 = vpop.f32.mrb[34].mxu1 }
 0x2f2   :  { %1340 = vperm.xlu1 %2247, %v1179_v9   ;;  %1345 = vperm.xlu0 %2246, %v1184_v15   ;;  %v1211_v18 = vpop.f32.mrb[35].mxu1 }
 0x2f5   :  { %v1214_v2 = vpop.f32.mrb[36].mxu1 }
 0x2f6   :  { %1350 = vperm.xlu1 %2247, %v1189_v16   ;;  %1355 = vperm.xlu0 %2246, %v1194_v26   ;;  %v1216_v22 = vpop.f32.mrb[37].mxu1  ;;  %v1782_v16 = vld [vmem:[#allocation11] sm:$0xff]  }
 0x2f7   :  { %v1783_v39 = vunpack.c.l.bf16 %v1782_v16  ;;  %v1787_v22 = vunpack.c.l.bf16 %v1845_v60 }
 0x2f9   :  { %v2944_v11 = vpop.f32.mrb[38].mxu1 }
 0x2fa   :  { %1360 = vperm.xlu1 %2247, %v1199_v45   ;;  %1365 = vperm.xlu0 %2246, %v1204_v42   ;;  %v1221_v33 = vpop.f32.mrb[39].mxu1 }
 0x2fe   :  { %1370 = vperm.xlu1 %2247, %v1209_v63   ;;  %1375 = vperm.xlu0 %2246, %v1214_v2  }
 0x302   :  { %1380 = vperm.xlu1 %2247, %v2944_v11  }
 0x306   :  { %1688 = vrot.lane.b32.xlu1 %v1687_v3, %s2490_s2 }
 0x32d   :  { %v1226_v17 = vpop.permute.xlu0 %1225 }
 0x32e   :  { %v1383_v4 = vadd.f32 %v1226_v17, %v2665_v25 }
 0x331   :  { %v1231_v5 = vpop.permute.xlu1 %1230  ;;  %v2950_v7 = vpop.permute.xlu0 %1422 }
 0x332   :  { %v1384_v9 = vadd.f32 %v2663_v24, %v1231_v5  ;;  %v1425_v10 = vadd.f32 %v2950_v7, %v1383_v4  ;;  %v1784_v24 = vunpack.c.h.bf16 %v1782_v16  ;;  %v2380_v4 = vld [vmem:[#allocation8 + $0x10] sm:$0xff] }
 0x333   :  { %v1459_v5 = vmul.f32 %v2380_v4, %v1787_v22 }
 0x334   :  { %v1426_v13 = vadd.f32 %v2950_v7, %v1384_v9  ;;  %2312 = vlog2.f32 %v1425_v10  ;;  %v1458_v2 = vmul.f32 %v2379_v12, %v1784_v24 }
 0x335   :  { %v1236_v15 = vpop.permute.xlu1 %1235 }
 0x336   :  { %v1385_v19 = vadd.f32 %v1236_v15, %v2672_v29  ;;  %2314 = vlog2.f32 %v1426_v13  ;;  %v1457_v29 = vmul.f32 %v2378_v57, %v1783_v39  ;;  %v1788_v13 = vunpack.c.h.bf16 %v1845_v60 }
 0x338   :  { %v1427_v23 = vadd.f32 %v2950_v7, %v1385_v19  ;;  %v1846_v19 = vld [vmem:[#allocation11 + $0x10] sm:$0xff]  }
 0x339   :  { %v1241_v26 = vpop.permute.xlu1 %1240 }
 0x33a   :  { %2316 = vlog2.f32 %v1427_v23  ;;  %v1386_v25 = vadd.f32 %v2670_v28, %v1241_v26 }
 0x33c   :  { %v1428_v45 = vadd.f32 %v2950_v7, %v1386_v25 }
 0x33d   :  { %v1246_v48 = vpop.permute.xlu0 %1245 }
 0x33e   :  { %v2313_v54 = vpop.eup %2312  ;;  %2318 = vlog2.f32 %v1428_v45  ;;  %v1387_v42 = vadd.f32 %v1246_v48, %v2679_v32  ;;  %v2381_v45 = vld [vmem:[#allocation8 + $0x18] sm:$0xff] }
 0x33f   :  { %v1490_v21 = vmul.f32 0.6931472, %v2313_v54  ;;  %v1791_v54 = vunpack.c.l.bf16 %v1846_v19 }
 0x340   :  { %v2315_v63 = vpop.eup %2314  ;;  %v1429_v18 = vadd.f32 %v2950_v7, %v1387_v42 }
 0x341   :  { %v1492_v28 = vmul.f32 0.6931472, %v2315_v63  ;;  %v1553_v51 = vmul.f32 %v1783_v39, %v1490_v21  ;;  %v1251_v33 = vpop.permute.xlu1 %1250 }
 0x342   :  { %2320 = vlog2.f32 %v1429_v18  ;;  %v1388_v36 = vadd.f32 %v2677_v31, %v1251_v33  ;;  %v2382_v18 = vld [vmem:[#allocation8 + $0x20] sm:$0xff] }
 0x343   :  { %v1554_v1 = vmul.f32 %v1784_v24, %v1492_v28  ;;  %v1585_v3 = vsub.f32 %v1457_v29, %v1553_v51  ;;  %v1460_v24 = vmul.f32 %v2381_v45, %v1788_v13  ;;  %v1461_v12 = vmul.f32 %v2382_v18, %v1791_v54  ;;  %v1847_v51 = vld [vmem:[#allocation11 + $0x18] sm:$0xff]  }
 0x344   :  { %v2317_v17 = vpop.eup %2316  ;;  %v1430_v32 = vadd.f32 %v2950_v7, %v1388_v36  ;;  %v1796_v45 = vunpack.c.h.bf16 %v1847_v51 }
 0x345   :  { %v1494_v9 = vmul.f32 0.6931472, %v2317_v17  ;;  %v1586_v10 = vsub.f32 %v1458_v2, %v1554_v1  ;;  %v1256_v15 = vpop.permute.xlu0 %1255 }
 0x346   :  { %2322 = vlog2.f32 %v1430_v32  ;;  %v1389_v16 = vadd.f32 %v1256_v15, %v2686_v35  ;;  %v2383_v32 = vld [vmem:[#allocation8 + $0x28] sm:$0xff] }
 0x347   :  { %v1555_v23 = vmul.f32 %v1787_v22, %v1494_v9  ;;  %v1618_v26 = vadd.f32 %v1586_v10, %v1585_v3  ;;  %v1792_v22 = vunpack.c.h.bf16 %v1846_v19  ;;  %v1795_v9 = vunpack.c.l.bf16 %v1847_v51 }
 0x348   :  { %v2319_v25 = vpop.eup %2318  ;;  %v1431_v31 = vadd.f32 %v2950_v7, %v1389_v16 }
 0x349   :  { %v1587_v39 = vsub.f32 %v1459_v5, %v1555_v23  ;;  %v1496_v48 = vmul.f32 0.6931472, %v2319_v25  ;;  %v1261_v42 = vpop.permute.xlu1 %1260  ;;  %v1462_v4 = vmul.f32 %v2383_v32, %v1792_v22  ;;  %v2970_v23 = vld [vmem:[#allocation11 + $0x20] sm:$0xff]   ;;  %v2384_v25 = vld [vmem:[#allocation8 + $0x30] sm:$0xff] }
 0x34a   :  { %2324 = vlog2.f32 %v1431_v31  ;;  %v1390_v57 = vadd.f32 %v2684_v34, %v1261_v42  ;;  %v1463_v31 = vmul.f32 %v2384_v25, %v1795_v9 }
 0x34b   :  { %v1619_v60 = vadd.f32 %v1618_v26, %v1587_v39  ;;  %v1556_v29 = vmul.f32 %v1788_v13, %v1496_v48 }
 0x34c   :  { %v2321_v21 = vpop.eup %2320  ;;  %v1432_v63 = vadd.f32 %v2950_v7, %v1390_v57  ;;  %v2975_v57 = vld [vmem:[#allocation11 + $0x28] sm:$0xff]  }
 0x34d   :  { %v1588_v35 = vsub.f32 %v1460_v24, %v1556_v29  ;;  %v1498_v2 = vmul.f32 0.6931472, %v2321_v21  ;;  %v1266_v28 = vpop.permute.xlu0 %1265  ;;  %v1804_v32 = vunpack.c.h.bf16 %v2975_v57 }
 0x34e   :  { %2326 = vlog2.f32 %v1432_v63  ;;  %v1391_v33 = vadd.f32 %v1266_v28, %v2693_v38  ;;  %v2385_v63 = vld [vmem:[#allocation8 + $0x38] sm:$0xff] }
 0x34f   :  { %v1620_v36 = vadd.f32 %v1619_v60, %v1588_v35  ;;  %v1557_v1 = vmul.f32 %v1791_v54, %v1498_v2  ;;  %v1464_v35 = vmul.f32 %v2385_v63, %v1796_v45 }
 0x350   :  { %v2323_v3 = vpop.eup %2322  ;;  %v1433_v34 = vadd.f32 %v2950_v7, %v1391_v33 }
 0x351   :  { %v1589_v17 = vsub.f32 %v1461_v12, %v1557_v1  ;;  %v1500_v5 = vmul.f32 0.6931472, %v2323_v3  ;;  %v1271_v10 = vpop.permute.xlu1 %1270  ;;  %v1800_v12 = vunpack.c.h.bf16 %v2970_v23  ;;  %v2386_v3 = vld [vmem:[#allocation8 + $0x40] sm:$0xff] }
 0x352   :  { %2328 = vlog2.f32 %v1433_v34  ;;  %v1392_v13 = vadd.f32 %v2691_v37, %v1271_v10  ;;  %v1799_v37 = vunpack.c.l.bf16 %v2970_v23  ;;  %v2988_v10 = vld [vmem:[#allocation11 + $0x38] sm:$0xff]  }
 0x353   :  { %v1621_v15 = vadd.f32 %v1620_v36, %v1589_v17  ;;  %v1558_v19 = vmul.f32 %v1792_v22, %v1500_v5  ;;  %v2979_v22 = vld [vmem:[#allocation11 + $0x30] sm:$0xff]  }
 0x354   :  { %v2325_v16 = vpop.eup %2324  ;;  %v1434_v38 = vadd.f32 %v2950_v7, %v1392_v13  ;;  %v1465_v34 = vmul.f32 %v2386_v3, %v1799_v37  ;;  %v1807_v5 = vunpack.c.l.bf16 %v2979_v22 }
 0x355   :  { %v1590_v26 = vsub.f32 %v1462_v4, %v1558_v19  ;;  %v1502_v39 = vmul.f32 0.6931472, %v2325_v16  ;;  %v1276_v24 = vpop.permute.xlu0 %1275 }
 0x356   :  { %2330 = vlog2.f32 %v1434_v38  ;;  %v1393_v48 = vadd.f32 %v1276_v24, %v2700_v41  ;;  %v1803_v41 = vunpack.c.l.bf16 %v2975_v57  ;;  %v2388_v38 = vld [vmem:[#allocation8 + $0x50] sm:$0xff]  ;;  %v1811_v24 = vunpack.c.l.bf16 %v2988_v10 }
 0x357   :  { %v1622_v54 = vadd.f32 %v1621_v15, %v1590_v26  ;;  %v1559_v42 = vmul.f32 %v1795_v9, %v1502_v39 }
 0x358   :  { %v2327_v60 = vpop.eup %2326  ;;  %v1435_v29 = vadd.f32 %v2950_v7, %v1393_v48  ;;  %v2993_v26 = vmul.f32 %v2388_v38, %v1803_v41  ;;  %v2998_v48 = vld [vmem:[#allocation11 + $0x40] sm:$0xff]   ;;  %v2393_v38 = vld [vmem:[#allocation8 + $0x78] sm:$0xff] }
 0x359   :  { %v1591_v21 = vsub.f32 %v1463_v31, %v1559_v42  ;;  %v1504_v18 = vmul.f32 0.6931472, %v2327_v60  ;;  %v1281_v2 = vpop.permute.xlu1 %1280  ;;  %v1286_v28 = vpop.permute.xlu0 %1285  ;;  %v2389_v42 = vld [vmem:[#allocation8 + $0x58] sm:$0xff] }
 0x35a   :  { %2332 = vlog2.f32 %v1435_v29  ;;  %v1394_v51 = vadd.f32 %v2698_v40, %v1281_v2  ;;  %v1395_v33 = vadd.f32 %v1286_v28, %v2707_v44  ;;  %v2387_v40 = vld [vmem:[#allocation8 + $0x48] sm:$0xff]  ;;  %v1808_v44 = vunpack.c.h.bf16 %v2979_v22  ;;  %v2390_v29 = vld [vmem:[#allocation8 + $0x60] sm:$0xff] }
 0x35b   :  { %v1623_v36 = vadd.f32 %v1622_v54, %v1591_v21  ;;  %v1560_v1 = vmul.f32 %v1796_v45, %v1504_v18  ;;  %v1466_v19 = vmul.f32 %v2387_v40, %v1800_v12  ;;  %v3002_v60 = vmul.f32 %v2389_v42, %v1804_v32 }
 0x35c   :  { %v2329_v17 = vpop.eup %2328  ;;  %v1436_v4 = vadd.f32 %v2950_v7, %v1394_v51  ;;  %v1437_v9 = vadd.f32 %v2950_v7, %v1395_v33  ;;  %v3006_v21 = vmul.f32 %v2390_v29, %v1807_v5  ;;  %v1812_v2 = vunpack.c.h.bf16 %v2988_v10  ;;  %v3015_v33 = vld [vmem:[#allocation11 + $0x48] sm:$0xff]  }
 0x35d   :  { %v1592_v13 = vsub.f32 %v1464_v35, %v1560_v1  ;;  %v1506_v15 = vmul.f32 0.6931472, %v2329_v17  ;;  %v1291_v16 = vpop.permute.xlu1 %1290  ;;  %v1296_v23 = vpop.permute.xlu0 %1295  ;;  %v2391_v35 = vld [vmem:[#allocation8 + $0x68] sm:$0xff]  ;;  %v1815_v1 = vunpack.c.l.bf16 %v2998_v48 }
 0x35e   :  { %2334 = vlog2.f32 %v1436_v4  ;;  %v1396_v25 = vadd.f32 %v2705_v43, %v1291_v16  ;;  %v1397_v31 = vadd.f32 %v1296_v23, %v2714_v47  ;;  %v3012_v18 = vmul.f32 %v2391_v35, %v1808_v44  ;;  %v2392_v4 = vld [vmem:[#allocation8 + $0x70] sm:$0xff] }
 0x35f   :  { %v1624_v39 = vadd.f32 %v1623_v36, %v1592_v13  ;;  %v1561_v45 = vmul.f32 %v1799_v37, %v1506_v15  ;;  %2336 = vlog2.f32 %v1437_v9  ;;  %v3022_v9 = vmul.f32 %v2392_v4, %v1811_v24 }
 0x360   :  { %v2331_v54 = vpop.eup %2330  ;;  %v1438_v43 = vadd.f32 %v2950_v7, %v1396_v25  ;;  %v1439_v47 = vadd.f32 %v2950_v7, %v1397_v31  ;;  %v1816_v16 = vunpack.c.h.bf16 %v2998_v48  ;;  %v3032_v25 = vmul.f32 %v2393_v38, %v1812_v2 }
 0x361   :  { %v1593_v37 = vsub.f32 %v1465_v34, %v1561_v45  ;;  %v1508_v63 = vmul.f32 0.6931472, %v2331_v54  ;;  %v1301_v28 = vpop.permute.xlu1 %1300  ;;  %v1306_v51 = vpop.permute.xlu0 %1305  ;;  %v2394_v45 = vld [vmem:[#allocation8 + $0x80] sm:$0xff] }
 0x362   :  { %2338 = vlog2.f32 %v1438_v43  ;;  %v1398_v36 = vadd.f32 %v2712_v46, %v1301_v28  ;;  %v1399_v3 = vadd.f32 %v1306_v51, %v2721_v50  ;;  %v1819_v46 = vunpack.c.l.bf16 %v3015_v33 }
 0x363   :  { %v1625_v34 = vadd.f32 %v1624_v39, %v1593_v37  ;;  %v1562_v17 = vmul.f32 %v1800_v12, %v1508_v63  ;;  %2340 = vlog2.f32 %v1439_v47  ;;  %v1652_v50 = vcombine.high %v2944_v11, %v2944_v11  ;;  %v3040_v11 = vld [vmem:[#allocation11 + $0x50] sm:$0xff]   ;;  %v2395_v63 = vld [vmem:[#allocation8 + $0x88] sm:$0xff] }
 0x364   :  { %v2333_v13 = vpop.eup %2332  ;;  %v1440_v15 = vadd.f32 %v2950_v7, %v1398_v36  ;;  %v1441_v40 = vadd.f32 %v2950_v7, %v1399_v3  ;;  %v3036_v54 = vmul.f32 %v2394_v45, %v1815_v1  ;;  %v1820_v47 = vunpack.c.h.bf16 %v3015_v33 }
 0x365   :  { %v1594_v23 = vsub.f32 %v1466_v19, %v1562_v17  ;;  %v1510_v12 = vmul.f32 0.6931472, %v2333_v13  ;;  %v1311_v31 = vpop.permute.xlu1 %1310  ;;  %v1316_v39 = vpop.permute.xlu0 %1315  ;;  %v3047_v35 = vmul.f32 %v2395_v63, %v1816_v16  ;;  %v1823_v4 = vunpack.c.l.bf16 %v3040_v11 }
 0x366   :  { %2342 = vlog2.f32 %v1440_v15  ;;  %v1400_v42 = vadd.f32 %v2719_v49, %v1311_v31  ;;  %v1401_v29 = vadd.f32 %v1316_v39, %v2728_v53  ;;  %v2396_v49 = vld [vmem:[#allocation8 + $0x90] sm:$0xff] }
 0x367   :  { %v1626_v19 = vadd.f32 %v1625_v34, %v1594_v23  ;;  %v1563_v43 = vmul.f32 %v1803_v41, %v1510_v12  ;;  %2344 = vlog2.f32 %v1441_v40  ;;  %v3052_v53 = vmul.f32 %v2396_v49, %v1819_v46 }
 0x368   :  { %v2335_v37 = vpop.eup %2334  ;;  %v1442_v28 = vadd.f32 %v2950_v7, %v1400_v42  ;;  %v1443_v51 = vadd.f32 %v2950_v7, %v1401_v29  ;;  %v3056_v41 = vrot.slane %v1652_v50, %v2939_v6  ;;  %v2397_v50 = vld [vmem:[#allocation8 + $0x98] sm:$0xff] }
 0x369   :  { %v2337_v36 = vpop.eup %2336  ;;  %v1595_v3 = vsub.f32 %v2993_v26, %v1563_v43  ;;  %v1512_v34 = vmul.f32 0.6931472, %v2335_v37  ;;  %v1321_v17 = vpop.permute.xlu1 %1320  ;;  %v3066_v26 = vmul.f32 %v2397_v50, %v1820_v47 }
 0x36a   :  { %v1326_v13 = vpop.permute.xlu0 %1325  ;;  %v1514_v15 = vmul.f32 0.6931472, %v2337_v36  ;;  %2346 = vlog2.f32 %v1442_v28  ;;  %v1402_v40 = vadd.f32 %v2726_v52, %v1321_v17  ;;  %v1660_v57 = vcombine.high %v3056_v41, %v3056_v41  ;;  %v2399_v17 = vld [vmem:[#allocation8 + $0xa8] sm:$0xff] }
 0x36b   :  { %v1403_v23 = vadd.f32 %v1326_v13, %v2735_v56  ;;  %v1627_v12 = vadd.f32 %v1626_v19, %v1595_v3  ;;  %v1564_v38 = vmul.f32 %v1804_v32, %v1512_v34  ;;  %2348 = vlog2.f32 %v1443_v51  ;;  %v2398_v19 = vld [vmem:[#allocation8 + $0xa0] sm:$0xff] }
 0x36c   :  { %v2339_v31 = vpop.eup %2338  ;;  %v1565_v39 = vmul.f32 %v1807_v5, %v1514_v15  ;;  %v1444_v45 = vadd.f32 %v2950_v7, %v1402_v40  ;;  %v1824_v56 = vunpack.c.h.bf16 %v3040_v11  ;;  %v3078_v43 = vmul.f32 %v2398_v19, %v1823_v4  ;;  %v3080_v5 = vld [vmem:[#allocation11 + $0x58] sm:$0xff]  }
 0x36d   :  { %v1445_v52 = vadd.f32 %v2950_v7, %v1403_v23  ;;  %v2341_v42 = vpop.eup %2340  ;;  %v1596_v32 = vsub.f32 %v3002_v60, %v1564_v38  ;;  %v1516_v29 = vmul.f32 0.6931472, %v2339_v31  ;;  %v1331_v37 = vpop.permute.xlu1 %1330 }
 0x36e   :  { %v1336_v63 = vpop.permute.xlu0 %1335  ;;  %v1597_v28 = vsub.f32 %v3006_v21, %v1565_v39  ;;  %v1518_v49 = vmul.f32 0.6931472, %v2341_v42  ;;  %2350 = vlog2.f32 %v1444_v45  ;;  %v1404_v51 = vadd.f32 %v2733_v55, %v1331_v37  ;;  %v2400_v42 = vld [vmem:[#allocation8 + $0xb0] sm:$0xff] }
 0x36f   :  { %v1628_v36 = vadd.f32 %v1627_v12, %v1596_v32  ;;  %v1566_v60 = vmul.f32 %v1808_v44, %v1516_v29  ;;  %2352 = vlog2.f32 %v1445_v52  ;;  %v1405_v41 = vadd.f32 %v1336_v63, %v2742_v59 }
 0x370   :  { %v2343_v3 = vpop.eup %2342  ;;  %v1567_v34 = vmul.f32 %v1811_v24, %v1518_v49  ;;  %v3091_v13 = vmul.f32 %v2399_v17, %v1824_v56  ;;  %v1446_v21 = vadd.f32 %v2950_v7, %v1404_v51  ;;  %v1827_v55 = vunpack.c.l.bf16 %v3080_v5 }
 0x371   :  { %v2345_v15 = vpop.eup %2344  ;;  %v1629_v40 = vadd.f32 %v1628_v36, %v1597_v28  ;;  %v1598_v22 = vsub.f32 %v3012_v18, %v1566_v60  ;;  %v1520_v44 = vmul.f32 0.6931472, %v2343_v3  ;;  %v1447_v59 = vadd.f32 %v2950_v7, %v1405_v41  ;;  %v1341_v23 = vpop.permute.xlu1 %1340 }
 0x372   :  { %v1346_v12 = vpop.permute.xlu0 %1345  ;;  %v1599_v24 = vsub.f32 %v3022_v9, %v1567_v34  ;;  %v1522_v38 = vmul.f32 0.6931472, %v2345_v15  ;;  %2354 = vlog2.f32 %v1446_v21  ;;  %v1406_v50 = vadd.f32 %v2740_v58, %v1341_v23 }
 0x373   :  { %v1630_v31 = vadd.f32 %v1629_v40, %v1598_v22  ;;  %v1568_v39 = vmul.f32 %v1812_v2, %v1520_v44  ;;  %2356 = vlog2.f32 %v1447_v59  ;;  %v1407_v45 = vadd.f32 %v1346_v12, %v2749_v62  ;;  %v3113_v62 = vld [vmem:[#allocation11 + $0x60] sm:$0xff]   ;;  %v2401_v12 = vld [vmem:[#allocation8 + $0xb8] sm:$0xff] }
 0x374   :  { %v2347_v52 = vpop.eup %2346  ;;  %v1569_v18 = vmul.f32 %v1815_v1, %v1522_v38  ;;  %v3106_v32 = vmul.f32 %v2400_v42, %v1827_v55  ;;  %v1448_v9 = vadd.f32 %v2950_v7, %v1406_v50  ;;  %v3110_v58 = vrot.slane %v1660_v57, %v2939_v6 }
 0x375   :  { %v2349_v29 = vpop.eup %2348  ;;  %v1631_v10 = vadd.f32 %v1630_v31, %v1599_v24  ;;  %v1600_v2 = vsub.f32 %v3032_v25, %v1568_v39  ;;  %v1524_v19 = vmul.f32 0.6931472, %v2347_v52  ;;  %v1449_v37 = vadd.f32 %v2950_v7, %v1407_v45  ;;  %v1351_v1 = vpop.permute.xlu1 %1350 }
 0x376   :  { %v1356_v63 = vpop.permute.xlu0 %1355  ;;  %v1601_v28 = vsub.f32 %v3036_v54, %v1569_v18  ;;  %v1526_v49 = vmul.f32 0.6931472, %v2349_v29  ;;  %2358 = vlog2.f32 %v1448_v9  ;;  %v1408_v51 = vadd.f32 %v2747_v61, %v1351_v1  ;;  %v3144_v9 = vld [vmem:[#allocation11 + $0x68] sm:$0xff]  }
 0x377   :  { %v1632_v36 = vadd.f32 %v1631_v10, %v1600_v2  ;;  %v1570_v6 = vmul.f32 %v1816_v16, %v1524_v19  ;;  %2360 = vlog2.f32 %v1449_v37  ;;  %v1409_v25 = vadd.f32 %v1356_v63, %v2756_v8  ;;  %v2402_v10 = vld [vmem:[#allocation8 + $0xc0] sm:$0xff] }
 0x378   :  { %v2351_v57 = vpop.eup %2350  ;;  %v1571_v60 = vmul.f32 %v1819_v46, %v1526_v49  ;;  %v1828_v41 = vunpack.c.h.bf16 %v3080_v5  ;;  %v1831_v3 = vunpack.c.l.bf16 %v3113_v62  ;;  %v1450_v54 = vadd.f32 %v2950_v7, %v1408_v51 }
 0x379   :  { %v2353_v34 = vpop.eup %2352  ;;  %v1633_v17 = vadd.f32 %v1632_v36, %v1601_v28  ;;  %v1602_v61 = vsub.f32 %v3047_v35, %v1570_v6  ;;  %v1528_v21 = vmul.f32 0.6931472, %v2351_v57  ;;  %v1451_v48 = vadd.f32 %v2950_v7, %v1409_v25  ;;  %v1361_v16 = vpop.permute.xlu1 %1360  ;;  %v1651_v28 = vld [vmem:[#allocation4] sm:$0x1]  ;;  %v1858_v36 = vld [vmem:[#allocation11 + $0x70] sm:$0xff]  }
 0x37a   :  { %v1366_v15 = vpop.permute.xlu0 %1365  ;;  %v1603_v8 = vsub.f32 %v3052_v53, %v1571_v60  ;;  %v1530_v40 = vmul.f32 0.6931472, %v2353_v34  ;;  %2362 = vlog2.f32 %v1450_v54  ;;  %v1410_v46 = vadd.f32 %v2754_v0, %v1361_v16 }
 0x37b   :  { %v1634_v22 = vadd.f32 %v1633_v17, %v1602_v61  ;;  %v1572_v44 = vmul.f32 %v1820_v47, %v1528_v21  ;;  %2364 = vlog2.f32 %v1451_v48  ;;  %v1411_v59 = vadd.f32 %v1366_v15, %v2764_v20 }
 0x37c   :  { %v2355_v23 = vpop.eup %2354  ;;  %v1573_v35 = vmul.f32 %v1823_v4, %v1530_v40  ;;  %v1480_v24 = vmul.f32 %v2401_v12, %v1828_v41  ;;  %v1452_v38 = vadd.f32 %v2950_v7, %v1410_v46  ;;  %v1668_v53 = vcombine.high %v3110_v58, %v3110_v58 }
 0x37d   :  { %v2357_v50 = vpop.eup %2356  ;;  %v1635_v0 = vadd.f32 %v1634_v22, %v1603_v8  ;;  %v1604_v31 = vsub.f32 %v3066_v26, %v1572_v44  ;;  %v1532_v33 = vmul.f32 0.6931472, %v2355_v23  ;;  %v1453_v47 = vadd.f32 %v2950_v7, %v1411_v59  ;;  %v1371_v39 = vpop.permute.xlu1 %1370  ;;  %v1859_v59 = vld [vmem:[#allocation11 + $0x78] sm:$0xff]  }
 0x37e   :  { %v1376_v20 = vpop.permute.xlu0 %1375  ;;  %v1605_v45 = vsub.f32 %v3078_v43, %v1573_v35  ;;  %v1534_v52 = vmul.f32 0.6931472, %v2357_v50  ;;  %2366 = vlog2.f32 %v1452_v38  ;;  %v1412_v4 = vadd.f32 %v2761_v14, %v1371_v39 }
 0x37f   :  { %v1636_v18 = vadd.f32 %v1635_v0, %v1604_v31  ;;  %v1574_v42 = vmul.f32 %v1824_v56, %v1532_v33  ;;  %2368 = vlog2.f32 %v1453_v47  ;;  %v1413_v26 = vadd.f32 %v1376_v20, %v2772_v30  ;;  %v2406_v0 = vld [vmem:[#allocation8 + $0xe0] sm:$0xff] }
 0x380   :  { %v2359_v58 = vpop.eup %2358  ;;  %v1575_v29 = vmul.f32 %v1827_v55, %v1534_v52  ;;  %v1481_v2 = vmul.f32 %v2402_v10, %v1831_v3  ;;  %v1832_v43 = vunpack.c.h.bf16 %v3113_v62  ;;  %v1454_v19 = vadd.f32 %v2950_v7, %v1412_v4  ;;  %v2407_v4 = vld [vmem:[#allocation8 + $0xe8] sm:$0xff] }
 0x381   :  { %v2361_v14 = vpop.eup %2360  ;;  %v1637_v37 = vadd.f32 %v1636_v18, %v1605_v45  ;;  %v1606_v11 = vsub.f32 %v3091_v13, %v1574_v42  ;;  %v1536_v56 = vmul.f32 0.6931472, %v2359_v58  ;;  %v1455_v1 = vadd.f32 %v2950_v7, %v1413_v26  ;;  %v1381_v63 = vpop.permute.xlu1 %1380  ;;  %v2403_v13 = vld [vmem:[#allocation8 + $0xc8] sm:$0xff] }
 0x382   :  { %v1538_v30 = vmul.f32 0.6931472, %v2361_v14  ;;  %v1835_v49 = vunpack.c.l.bf16 %v3144_v9  ;;  %2370 = vlog2.f32 %v1454_v19  ;;  %v1414_v5 = vadd.f32 %v2770_v27, %v1381_v63  ;;  %v2409_v63 = vld [vmem:[#allocation8 + $0xf8] sm:$0xff] }
 0x383   :  { %v1638_v55 = vadd.f32 %v1637_v37, %v1606_v11  ;;  %v1607_v62 = vsub.f32 %v3106_v32, %v1575_v29  ;;  %v1576_v51 = vmul.f32 %v1828_v41, %v1536_v56  ;;  %2372 = vlog2.f32 %v1455_v1 }
 0x384   :  { %v2363_v6 = vpop.eup %2362  ;;  %v1577_v25 = vmul.f32 %v1831_v3, %v1538_v30  ;;  %v1482_v57 = vmul.f32 %v2403_v13, %v1832_v43  ;;  %v1456_v60 = vadd.f32 %v2950_v7, %v1414_v5  ;;  %v1670_v54 = vadd.f32 %v1668_v53, %v1651_v28  ;;  %v2404_v3 = vld [vmem:[#allocation8 + $0xd0] sm:$0xff] }
 0x385   :  { %v2365_v34 = vpop.eup %2364  ;;  %v1639_v17 = vadd.f32 %v1638_v55, %v1607_v62  ;;  %v1608_v61 = vsub.f32 %v1480_v24, %v1576_v51  ;;  %v1540_v21 = vmul.f32 0.6931472, %v2363_v6  ;;  %v1836_v48 = vunpack.c.h.bf16 %v3144_v9  ;;  %v1689_v27 = vpop.permute.xlu1 %1688  ;;  %v2405_v24 = vld [vmem:[#allocation8 + $0xd8] sm:$0xff] }
 0x386   :  { %v1542_v16 = vmul.f32 0.6931472, %v2365_v34  ;;  %v1839_v15 = vunpack.c.l.bf16 %v1858_v36  ;;  %2374 = vlog2.f32 %v1456_v60  ;;  %v1691_v32 = vadd.f32 %v1689_v27, %v1670_v54 }
 0x387   :  { %v1640_v41 = vadd.f32 %v1639_v17, %v1608_v61  ;;  %v1609_v8 = vsub.f32 %v1481_v2, %v1577_v25  ;;  %v1578_v40 = vmul.f32 %v1832_v43, %v1540_v21  ;;  %v1483_v46 = vmul.f32 %v2404_v3, %v1835_v49  ;;  %v2408_v43 = vld [vmem:[#allocation8 + $0xf0] sm:$0xff] }
 0x388   :  { %v2367_v22 = vpop.eup %2366  ;;  %v1579_v44 = vmul.f32 %v1835_v49, %v1542_v16  ;;  %v1840_v7 = vunpack.c.h.bf16 %v1858_v36  ;;  %1693 = vst.msk [vmem:[#allocation4] sm:$0x1] %vm402_vm8, %v1691_v32  ;;  %v1484_v38 = vmul.f32 %v2405_v24, %v1836_v48  ;;  %v1485_v31 = vmul.f32 %v2406_v0, %v1839_v15 }
 0x389   :  { %v2369_v23 = vpop.eup %2368  ;;  %v1641_v35 = vadd.f32 %v1640_v41, %v1609_v8  ;;  %v1610_v12 = vsub.f32 %v1482_v57, %v1578_v40  ;;  %v1544_v53 = vmul.f32 0.6931472, %v2367_v22  ;;  %v1843_v20 = vunpack.c.l.bf16 %v1859_v59 }
 0x38a   :  { %v1546_v50 = vmul.f32 0.6931472, %v2369_v23  ;;  %v1611_v47 = vsub.f32 %v1483_v46, %v1579_v44  ;;  %v1486_v18 = vmul.f32 %v2407_v4, %v1840_v7  ;;  %v1844_v58 = vunpack.c.h.bf16 %v1859_v59 }
 0x38b   :  { %v1642_v33 = vadd.f32 %v1641_v35, %v1610_v12  ;;  %v1580_v39 = vmul.f32 %v1836_v48, %v1544_v53  ;;  %v1487_v19 = vmul.f32 %v2408_v43, %v1843_v20  ;;  %v1710_v25 = vstv %s1698_s14 }
 0x38c   :  { %v2371_v45 = vpop.eup %2370  ;;  %v1581_v52 = vmul.f32 %v1839_v15, %v1546_v50  ;;  %v1488_v28 = vmul.f32 %v2409_v63, %v1844_v58  ;;  %2376 = vrcp.f32 %v1710_v25 }
 0x38d   :  { %v2373_v42 = vpop.eup %2372  ;;  %v1612_v9 = vsub.f32 %v1484_v38, %v1580_v39  ;;  %v1548_v26 = vmul.f32 0.6931472, %v2371_v45  ;;  %v1643_v29 = vadd.f32 %v1642_v33, %v1611_v47 }
 0x38e   :  { %v1550_v10 = vmul.f32 0.6931472, %v2373_v42  ;;  %v1613_v14 = vsub.f32 %v1485_v31, %v1581_v52 }
 0x38f   :  { %v1582_v2 = vmul.f32 %v1840_v7, %v1548_v26  ;;  %v1644_v37 = vadd.f32 %v1643_v29, %v1612_v9 }
 0x390   :  { %v2375_v11 = vpop.eup %2374  ;;  %v1583_v56 = vmul.f32 %v1843_v20, %v1550_v10 }
 0x391   :  { %v1552_v1 = vmul.f32 0.6931472, %v2375_v11  ;;  %v1614_v30 = vsub.f32 %v1486_v18, %v1582_v2  ;;  %v1645_v49 = vadd.f32 %v1644_v37, %v1613_v14 }
 0x392   :  { %v1615_v55 = vsub.f32 %v1487_v19, %v1583_v56 }
 0x393   :  { %v1584_v5 = vmul.f32 %v1844_v58, %v1552_v1  ;;  %v1646_v62 = vadd.f32 %v1645_v49, %v1614_v30 }
 0x395   :  { %v1616_v51 = vsub.f32 %v1488_v28, %v1584_v5  ;;  %v1647_v36 = vadd.f32 %v1646_v62, %v1615_v55 }
 0x396   :  { %v2377_v61 = vpop.eup %2376 }
 0x397   :  { %v1648_v6 = vadd.f32 %v1647_v36, %v1616_v51 }
 0x399   :  { %1700 = vadd.xlane.f32.xlu0 %v1648_v6 }
 0x426   :  { %v1701_v13 = vpop.xlane.xlu0 %1700 }
 0x427   :  { %v1702_v57 = vrot.slane %v1701_v13, 4 }
 0x429   :  { %v1703_v60 = vadd.f32 %v1702_v57, %v1701_v13 }
 0x42b   :  { %v1704_v54 = vrot.slane %v1703_v60, 2 }
 0x42d   :  { %v1705_v34 = vadd.f32 %v1704_v54, %v1703_v60 }
 0x42f   :  { %v1706_v17 = vrot.slane %v1705_v34, 1 }
 0x431   :  { %v1707_v21 = vadd.f32 %v1706_v17, %v1705_v34 }
 0x433   :  { %2148 = vpush %v1707_v21 }
 0x434   :  { %2150 = vpush %v2377_v61 }
 0x464   :  { %s2149_s15 = spop %2148 }
 0x465   :  { %s1709_s18 = ssub.f32 0.0, %s2149_s15  ;;  %s2151_s19 = spop %2150 }
 0x467   :  { %s1713_s20 = smul.f32 %s2151_s19, %s1709_s18 }
 0x469   :  { %v1714_v48 = vstv %s1713_s20 }
 0x46a   :  { %1715 = vst.msk [vmem:[#allocation13] sm:$0x1] %vm402_vm8, %v1714_v48 }
 0x46b   :  { %2465 = shalt.err (!%p2462_p6)
}
 0x46c   :  { %s2466_s24 = scalar_lea.hbm %s3178_s3, 16 }
 0x46d   :  { %p2467_p7 = scmp.ne.s32.totalorder %s3178_s3, %s2466_s24  ;;  %p2470_p8 = scmp.lt.u32.totalorder %s2466_s24, %s3178_s3 }
 0x46f   :  { %p2472_p9 = pnand %p2470_p8, %p2467_p7 }
 0x471   :  { %2475 = shalt.err (!%p2472_p9)
}
 0x472   :  { %1725 = dma.vmem_to_hbm [thread:$0]  %s1723_s17, 16, %s3178_s3, [#allocation10]  }
 0x473   :  { %2480 = dma.done.wait [#allocation10], 16  }
 0x474   :  { %2481 = vsyncadd [#allocation10], 4294967280 }
 0x475   :  { %1729 = vsyncpa [#allocation9], 1 }
 0x476   :  { %1730 = vsyncpa [#allocation12], 1 }
 0x477   :  { %1731 = vsyncpa [#allocation10], 1 }

</bundles_post_ra>
